<compile_context>
chip_gen: v7x
topology: tpu7x:2x2x1
jax: 0.10.0
libtpu: 0.0.40
codegen_flags: <defaults>
</compile_context>

<pallas_src>
import functools

import jax
import jax.numpy as jnp
import numpy as np
from jax.experimental import pallas as pl
from jax.experimental.pallas import tpu as pltpu

STATE_EMBED_HID = 256
ACTION_EMBED_HID = 128
OUT_LIN = 128
NUM_BINS = 80
NBINS_PAD = 128          # lane-padded logits width
OUT_PAD = 128            # lane-dense output width (>= act_dim)
NEG_LOGIT = -1e30        # bias for padded bins -> never selected by argmax
LOW_ACT = -1.0
UP_ACT = 1.0
BIN_SIZE = (UP_ACT - LOW_ACT) / NUM_BINS


def _round_up(n, m):
    return ((n + m - 1) // m) * m


def ar_policy_kernel(x_ref, w0, b0, w1, b1, w2, b2, w3, b3,
                     aw1s, ab1, aw1a, aw2, ab2, lw, lb,
                     gum_ref, unif_ref, out_ref, *, act_dim, deterministic):
    f32 = jnp.float32

    def mm(a, w):
        # Cast the activation to the weight dtype (bf16 weights -> bf16 MXU inputs),
        # always accumulate in f32.  Elementwise math stays f32 (v5e has no bf16 VPU).
        return jnp.dot(a.astype(w.dtype), w, preferred_element_type=f32)

    x = x_ref[...]

    # ---- state_embed: Linear/ReLU x3 then Linear (no final activation) ----
    h = jnp.maximum(mm(x, w0[...]) + b0[...], 0.0)
    h = jnp.maximum(mm(h, w1[...]) + b1[...], 0.0)
    h = jnp.maximum(mm(h, w2[...]) + b2[...], 0.0)
    state_d = mm(h, w3[...]) + b3[...]

    # ---- hoisted per-head state projections: ONE wide matmul (N = act_dim*128) ----
    zs_all = mm(state_d, aw1s[...]) + ab1[...]                  # [TB, act_dim*128]

    tb = x.shape[0]
    a_acc = jnp.zeros((tb, OUT_PAD), dtype=f32)
    col_idx = jax.lax.broadcasted_iota(jnp.int32, (tb, OUT_PAD), 1)
    bins = jax.lax.broadcasted_iota(jnp.int32, (tb, NBINS_PAD), 1)

    a_cols = []
    # ---- autoregressive action heads (act_dim is small & static -> python loop) ----
    for i in range(act_dim):
        z = zs_all[:, i * ACTION_EMBED_HID:(i + 1) * ACTION_EMBED_HID]
        if i > 0:
            # lin_mod[i-1](a[:, :i]) on the VPU: K = i is far too small for the MXU.
            lw_i = lw[i - 1]                                    # [act_dim, OUT_LIN]
            lin_out = lb[i - 1] + a_cols[0] * lw_i[0:1, :]      # [TB, OUT_LIN]
            for j in range(1, i):
                lin_out = lin_out + a_cols[j] * lw_i[j:j + 1, :]
            # cat([state_d, lin_out]) @ W  ==  (hoisted state part) + lin_out @ W_lin
            z = z + mm(lin_out, aw1a[i - 1])
        h1 = jnp.maximum(z, 0.0)
        logits = mm(h1, aw2[i]) + ab2[i]                        # [TB, NBINS_PAD]

        # Categorical sample via Gumbel-max (first-argmax tie break, like argmax).
        gl = logits + gum_ref[i]
        m = jnp.max(gl, axis=-1, keepdims=True)
        l_i = jnp.min(jnp.where(gl >= m, bins, NBINS_PAD),
                      axis=-1, keepdims=True).astype(f32)       # [TB, 1]

        u = 0.5 if deterministic else unif_ref[i]               # [TB, 1] or scalar
        a_i = LOW_ACT + (l_i + u) * BIN_SIZE                    # [TB, 1]

        a_cols.append(a_i)
        a_acc = jnp.where(col_idx == i, a_i, a_acc)             # scatter into column i

    out_ref[...] = a_acc                                        # lane-dense [TB, 128]


def init_params(key, latent_dim, state_dim, act_dim, dtype=jnp.float32):
    """dtype applies to the matmul weight matrices only; biases / VPU tables stay f32."""
    assert 2 <= act_dim <= OUT_PAD
    d_in = latent_dim + state_dim
    kit = iter(jax.random.split(key, 16))

    def w(shape, scale=0.1):
        return scale * jax.random.normal(next(kit), shape, dtype=jnp.float32)

    p = {}
    p["w0"], p["b0"] = w((d_in, STATE_EMBED_HID)).astype(dtype), w((1, STATE_EMBED_HID), 0.01)
    p["w1"], p["b1"] = w((STATE_EMBED_HID, STATE_EMBED_HID)).astype(dtype), w((1, STATE_EMBED_HID), 0.01)
    p["w2"], p["b2"] = w((STATE_EMBED_HID, STATE_EMBED_HID)).astype(dtype), w((1, STATE_EMBED_HID), 0.01)
    p["w3"], p["b3"] = w((STATE_EMBED_HID, STATE_EMBED_HID)).astype(dtype), w((1, STATE_EMBED_HID), 0.01)

    # act_mod head i first layer, split: state part (hoisted, packed wide) + lin part.
    aw1s = w((act_dim, STATE_EMBED_HID, ACTION_EMBED_HID))
    p["aw1s_all"] = jnp.transpose(aw1s, (1, 0, 2)).reshape(
        STATE_EMBED_HID, act_dim * ACTION_EMBED_HID).astype(dtype)
    ab1 = w((act_dim, ACTION_EMBED_HID), 0.01)
    p["ab1_all"] = ab1.reshape(1, act_dim * ACTION_EMBED_HID)
    p["aw1a"] = w((act_dim - 1, OUT_LIN, ACTION_EMBED_HID)).astype(dtype)   # heads 1..act_dim-1

    # act_mod second layer: pad NUM_BINS -> NBINS_PAD (zero weights, -inf-ish bias).
    aw2 = w((act_dim, ACTION_EMBED_HID, NUM_BINS))
    p["aw2"] = jnp.pad(aw2, ((0, 0), (0, 0), (0, NBINS_PAD - NUM_BINS))).astype(dtype)
    ab2 = w((act_dim, 1, NUM_BINS), 0.01)
    p["ab2"] = jnp.pad(ab2, ((0, 0), (0, 0), (0, NBINS_PAD - NUM_BINS)),
                       constant_values=NEG_LOGIT)

    # lin_mod[i-1]: Linear(i, 128).  Row j is the weight for a_j; rows j >= i unused.
    # Kept f32: consumed on the VPU, not the MXU.
    p["lw"] = w((act_dim - 1, act_dim, OUT_LIN))
    p["lb"] = w((act_dim - 1, 1, OUT_LIN), 0.01)
    return p


def ar_policy_forward(latent, state, params, act_dim, gumbel, unif,
                      deterministic=False, block_b=256):
    f32 = jnp.float32
    x = jnp.concatenate([latent, state], axis=1).astype(f32)
    B, d_in = x.shape

    # Batch tile: MXU-native 256 when the batch is big enough, else the padded batch.
    tb = min(block_b, _round_up(max(B, 1), 8))
    b_pad = _round_up(B, tb)
    pad_b = b_pad - B

    x_p = jnp.pad(x, ((0, pad_b), (0, 0)))
    gum_p = jnp.pad(gumbel.astype(f32),
                    ((0, 0), (0, pad_b), (0, NBINS_PAD - NUM_BINS)))
    unif_p = jnp.pad(unif.astype(f32), ((0, 0), (0, pad_b), (0, 0)))

    weight_keys = ("w0", "b0", "w1", "b1", "w2", "b2", "w3", "b3",
                   "aw1s_all", "ab1_all", "aw1a", "aw2", "ab2", "lw", "lb")
    ordered = (x_p,) + tuple(params[k] for k in weight_keys) + (gum_p, unif_p)

    def resident(a):
        nd = a.ndim
        return pl.BlockSpec(a.shape, lambda b, _nd=nd: (0,) * _nd)

    in_specs = [pl.BlockSpec((tb, d_in), lambda b: (b, 0))]
    in_specs += [resident(params[k]) for k in weight_keys]
    in_specs += [pl.BlockSpec((act_dim, tb, NBINS_PAD), lambda b: (0, b, 0)),
                 pl.BlockSpec((act_dim, tb, 1), lambda b: (0, b, 0))]
    out_spec = pl.BlockSpec((tb, OUT_PAD), lambda b: (b, 0))

    kernel = functools.partial(ar_policy_kernel, act_dim=act_dim,
                               deterministic=deterministic)
    out = pl.pallas_call(
        kernel,
        out_shape=jax.ShapeDtypeStruct((b_pad, OUT_PAD), f32),
        grid=(b_pad // tb,),
        in_specs=in_specs,
        out_specs=out_spec,
        compiler_params=pltpu.CompilerParams(dimension_semantics=("parallel",)),
    )(*ordered)
    return out[:B, :act_dim]


def ar_policy_reference(latent, state, params, act_dim, gumbel, unif,
                        deterministic=False):
    """Pure-JAX reference with identical noise / tie-break semantics (unpadded bins)."""
    f32 = jnp.float32
    x = jnp.concatenate([latent, state], axis=1).astype(f32)
    relu = lambda v: jnp.maximum(v, 0.0)
    dot = lambda a, w: a @ w.astype(f32)

    h = relu(dot(x, params["w0"]) + params["b0"])
    h = relu(dot(h, params["w1"]) + params["b1"])
    h = relu(dot(h, params["w2"]) + params["b2"])
    state_d = dot(h, params["w3"]) + params["b3"]
    zs_all = dot(state_d, params["aw1s_all"]) + params["ab1_all"]

    a_cols = []
    for i in range(act_dim):
        z = zs_all[:, i * ACTION_EMBED_HID:(i + 1) * ACTION_EMBED_HID]
        if i > 0:
            lin_out = params["lb"][i - 1] + a_cols[0] * params["lw"][i - 1, 0]
            for j in range(1, i):
                lin_out = lin_out + a_cols[j] * params["lw"][i - 1, j]
            z = z + dot(lin_out, params["aw1a"][i - 1])
        logits = dot(relu(z), params["aw2"][i][:, :NUM_BINS]) + params["ab2"][i][:, :NUM_BINS]
        l = jnp.argmax(logits + gumbel[i], axis=-1).astype(f32)[:, None]
        u = 0.5 if deterministic else unif[i]
        a_cols.append(LOW_ACT + (l + u) * BIN_SIZE)
    return jnp.concatenate(a_cols, axis=1)


if __name__ == "__main__":
    latent_dim, state_dim, act_dim, B = 8, 16, 4, 2

    key = jax.random.PRNGKey(0)
    k_param, k_lat, k_state, k_gum, k_uni, k_big = jax.random.split(key, 6)

    params = init_params(k_param, latent_dim, state_dim, act_dim)
    latent = jax.random.normal(k_lat, (B, latent_dim), dtype=jnp.float32)
    state = jax.random.normal(k_state, (B, state_dim), dtype=jnp.float32)

    # Pre-drawn noise: gumbel for Categorical.sample(), uniform for within-bin sample.
    gumbel = jax.random.gumbel(k_gum, (act_dim, B, NUM_BINS), dtype=jnp.float32)
    unif = jax.random.uniform(k_uni, (act_dim, B, 1), dtype=jnp.float32)

    # --- stochastic path ---
    actions = jax.block_until_ready(
        ar_policy_forward(latent, state, params, act_dim, gumbel, unif,
                          deterministic=False))
    ref = ar_policy_reference(latent, state, params, act_dim, gumbel, unif,
                              deterministic=False)
    np.testing.assert_allclose(np.asarray(actions), np.asarray(ref),
                               rtol=1e-5, atol=1e-6)

    # --- deterministic path (bin-center within the sampled bin, as in the torch code) ---
    det = jax.block_until_ready(
        ar_policy_forward(latent, state, params, act_dim, gumbel, unif,
                          deterministic=True))
    det_ref = ar_policy_reference(latent, state, params, act_dim, gumbel, unif,
                                  deterministic=True)
    np.testing.assert_allclose(np.asarray(det), np.asarray(det_ref),
                               rtol=1e-5, atol=1e-6)

    # --- multi-tile batch grid (grid > 1) ---
    B2 = 20
    k1, k2, k3, k4 = jax.random.split(k_big, 4)
    latent2 = jax.random.normal(k1, (B2, latent_dim), dtype=jnp.float32)
    state2 = jax.random.normal(k2, (B2, state_dim), dtype=jnp.float32)
    gumbel2 = jax.random.gumbel(k3, (act_dim, B2, NUM_BINS), dtype=jnp.float32)
    unif2 = jax.random.uniform(k4, (act_dim, B2, 1), dtype=jnp.float32)
    big = jax.block_until_ready(
        ar_policy_forward(latent2, state2, params, act_dim, gumbel2, unif2,
                          deterministic=False, block_b=8))
    big_ref = ar_policy_reference(latent2, state2, params, act_dim, gumbel2, unif2,
                                  deterministic=False)
    np.testing.assert_allclose(np.asarray(big), np.asarray(big_ref),
                               rtol=1e-5, atol=1e-6)

    # --- bf16 matmul weights (v6e/v7x recommendation): compile / sanity run only,
    #     since reduced-precision logits can legitimately flip argmax bins.
    params_bf16 = init_params(k_param, latent_dim, state_dim, act_dim,
                              dtype=jnp.bfloat16)
    a16 = jax.block_until_ready(
        ar_policy_forward(latent, state, params_bf16, act_dim, gumbel, unif))
    assert a16.shape == (B, act_dim)
    assert bool(jnp.all(jnp.isfinite(a16)))

    print("KERNEL_OK")
</pallas_src>

<mosaic_0001>
module attributes {stable_mosaic.version = 11 : i64} {
  func.func @ar_policy_kernel(%arg0: i32, %arg1: memref<8x24xf32, #tpu.memory_space<vmem>>, %arg2: memref<24x256xf32, #tpu.memory_space<vmem>>, %arg3: memref<1x256xf32, #tpu.memory_space<vmem>>, %arg4: memref<256x256xf32, #tpu.memory_space<vmem>>, %arg5: memref<1x256xf32, #tpu.memory_space<vmem>>, %arg6: memref<256x256xf32, #tpu.memory_space<vmem>>, %arg7: memref<1x256xf32, #tpu.memory_space<vmem>>, %arg8: memref<256x256xf32, #tpu.memory_space<vmem>>, %arg9: memref<1x256xf32, #tpu.memory_space<vmem>>, %arg10: memref<256x512xf32, #tpu.memory_space<vmem>>, %arg11: memref<1x512xf32, #tpu.memory_space<vmem>>, %arg12: memref<3x128x128xf32, #tpu.memory_space<vmem>>, %arg13: memref<4x128x128xf32, #tpu.memory_space<vmem>>, %arg14: memref<4x1x128xf32, #tpu.memory_space<vmem>>, %arg15: memref<3x4x128xf32, #tpu.memory_space<vmem>>, %arg16: memref<3x1x128xf32, #tpu.memory_space<vmem>>, %arg17: memref<4x8x128xf32, #tpu.memory_space<vmem>>, %arg18: memref<4x8x1xf32, #tpu.memory_space<vmem>>, %arg19: memref<8x128xf32, #tpu.memory_space<vmem>>) attributes {dimension_semantics = [#tpu.dimension_semantics<parallel>], iteration_bounds = array<i64: 1>, scalar_prefetch = 0 : i64, scratch_operands = 0 : i64, tpu.core_type = #tpu.core_type<tc>, window_params = [{transform_indices = @transform_0, window_bounds = array<i64: 8, 24>}, {pipeline_mode = #tpu.pipeline_mode<synchronous>, transform_indices = @transform_1, window_bounds = array<i64: 24, 256>}, {pipeline_mode = #tpu.pipeline_mode<synchronous>, transform_indices = @transform_2, window_bounds = array<i64: 1, 256>}, {pipeline_mode = #tpu.pipeline_mode<synchronous>, transform_indices = @transform_3, window_bounds = array<i64: 256, 256>}, {pipeline_mode = #tpu.pipeline_mode<synchronous>, transform_indices = @transform_4, window_bounds = array<i64: 1, 256>}, {pipeline_mode = #tpu.pipeline_mode<synchronous>, transform_indices = @transform_5, window_bounds = array<i64: 256, 256>}, {pipeline_mode = #tpu.pipeline_mode<synchronous>, transform_indices = @transform_6, window_bounds = array<i64: 1, 256>}, {pipeline_mode = #tpu.pipeline_mode<synchronous>, transform_indices = @transform_7, window_bounds = array<i64: 256, 256>}, {pipeline_mode = #tpu.pipeline_mode<synchronous>, transform_indices = @transform_8, window_bounds = array<i64: 1, 256>}, {pipeline_mode = #tpu.pipeline_mode<synchronous>, transform_indices = @transform_9, window_bounds = array<i64: 256, 512>}, {pipeline_mode = #tpu.pipeline_mode<synchronous>, transform_indices = @transform_10, window_bounds = array<i64: 1, 512>}, {pipeline_mode = #tpu.pipeline_mode<synchronous>, transform_indices = @transform_11, window_bounds = array<i64: 3, 128, 128>}, {pipeline_mode = #tpu.pipeline_mode<synchronous>, transform_indices = @transform_12, window_bounds = array<i64: 4, 128, 128>}, {pipeline_mode = #tpu.pipeline_mode<synchronous>, transform_indices = @transform_13, window_bounds = array<i64: 4, 1, 128>}, {pipeline_mode = #tpu.pipeline_mode<synchronous>, transform_indices = @transform_14, window_bounds = array<i64: 3, 4, 128>}, {pipeline_mode = #tpu.pipeline_mode<synchronous>, transform_indices = @transform_15, window_bounds = array<i64: 3, 1, 128>}, {transform_indices = @transform_16, window_bounds = array<i64: 4, 8, 128>}, {transform_indices = @transform_17, window_bounds = array<i64: 4, 8, 1>}, {transform_indices = @transform_18, window_bounds = array<i64: 8, 128>}]} {
    %c0 = arith.constant 0 : index
    %c0_0 = arith.constant 0 : index
    %0 = vector.load %arg1[%c0, %c0_0] : memref<8x24xf32, #tpu.memory_space<vmem>>, vector<8x24xf32>
    %c0_1 = arith.constant 0 : index
    %c0_2 = arith.constant 0 : index
    %1 = vector.load %arg2[%c0_1, %c0_2] : memref<24x256xf32, #tpu.memory_space<vmem>>, vector<24x256xf32>
    %cst = arith.constant dense<0.000000e+00> : vector<8x256xf32>
    %2 = tpu.matmul %0, %1, %cst {dimension_numbers = #tpu.dot_dimension_numbers<[1], [0], [0], [1], [0, 0, 1, 1], [], []>} : vector<8x24xf32>, vector<24x256xf32>, vector<8x256xf32> -> vector<8x256xf32>
    %c0_3 = arith.constant 0 : index
    %c0_4 = arith.constant 0 : index
    %3 = vector.load %arg3[%c0_3, %c0_4] : memref<1x256xf32, #tpu.memory_space<vmem>>, vector<1x256xf32>
    %4 = vector.broadcast %3 : vector<1x256xf32> to vector<8x256xf32>
    %5 = arith.addf %2, %4 : vector<8x256xf32>
    %cst_5 = arith.constant 0.000000e+00 : f32
    %6 = vector.broadcast %cst_5 : f32 to vector<8x256xf32>
    %7 = arith.maximumf %5, %6 : vector<8x256xf32>
    %c0_6 = arith.constant 0 : index
    %c0_7 = arith.constant 0 : index
    %8 = vector.load %arg4[%c0_6, %c0_7] : memref<256x256xf32, #tpu.memory_space<vmem>>, vector<256x256xf32>
    %cst_8 = arith.constant dense<0.000000e+00> : vector<8x256xf32>
    %9 = tpu.matmul %7, %8, %cst_8 {dimension_numbers = #tpu.dot_dimension_numbers<[1], [0], [0], [1], [0, 0, 1, 1], [], []>} : vector<8x256xf32>, vector<256x256xf32>, vector<8x256xf32> -> vector<8x256xf32>
    %c0_9 = arith.constant 0 : index
    %c0_10 = arith.constant 0 : index
    %10 = vector.load %arg5[%c0_9, %c0_10] : memref<1x256xf32, #tpu.memory_space<vmem>>, vector<1x256xf32>
    %11 = vector.broadcast %10 : vector<1x256xf32> to vector<8x256xf32>
    %12 = arith.addf %9, %11 : vector<8x256xf32>
    %cst_11 = arith.constant 0.000000e+00 : f32
    %13 = vector.broadcast %cst_11 : f32 to vector<8x256xf32>
    %14 = arith.maximumf %12, %13 : vector<8x256xf32>
    %c0_12 = arith.constant 0 : index
    %c0_13 = arith.constant 0 : index
    %15 = vector.load %arg6[%c0_12, %c0_13] : memref<256x256xf32, #tpu.memory_space<vmem>>, vector<256x256xf32>
    %cst_14 = arith.constant dense<0.000000e+00> : vector<8x256xf32>
    %16 = tpu.matmul %14, %15, %cst_14 {dimension_numbers = #tpu.dot_dimension_numbers<[1], [0], [0], [1], [0, 0, 1, 1], [], []>} : vector<8x256xf32>, vector<256x256xf32>, vector<8x256xf32> -> vector<8x256xf32>
    %c0_15 = arith.constant 0 : index
    %c0_16 = arith.constant 0 : index
    %17 = vector.load %arg7[%c0_15, %c0_16] : memref<1x256xf32, #tpu.memory_space<vmem>>, vector<1x256xf32>
    %18 = vector.broadcast %17 : vector<1x256xf32> to vector<8x256xf32>
    %19 = arith.addf %16, %18 : vector<8x256xf32>
    %cst_17 = arith.constant 0.000000e+00 : f32
    %20 = vector.broadcast %cst_17 : f32 to vector<8x256xf32>
    %21 = arith.maximumf %19, %20 : vector<8x256xf32>
    %c0_18 = arith.constant 0 : index
    %c0_19 = arith.constant 0 : index
    %22 = vector.load %arg8[%c0_18, %c0_19] : memref<256x256xf32, #tpu.memory_space<vmem>>, vector<256x256xf32>
    %cst_20 = arith.constant dense<0.000000e+00> : vector<8x256xf32>
    %23 = tpu.matmul %21, %22, %cst_20 {dimension_numbers = #tpu.dot_dimension_numbers<[1], [0], [0], [1], [0, 0, 1, 1], [], []>} : vector<8x256xf32>, vector<256x256xf32>, vector<8x256xf32> -> vector<8x256xf32>
    %c0_21 = arith.constant 0 : index
    %c0_22 = arith.constant 0 : index
    %24 = vector.load %arg9[%c0_21, %c0_22] : memref<1x256xf32, #tpu.memory_space<vmem>>, vector<1x256xf32>
    %25 = vector.broadcast %24 : vector<1x256xf32> to vector<8x256xf32>
    %26 = arith.addf %23, %25 : vector<8x256xf32>
    %c0_23 = arith.constant 0 : index
    %c0_24 = arith.constant 0 : index
    %27 = vector.load %arg10[%c0_23, %c0_24] : memref<256x512xf32, #tpu.memory_space<vmem>>, vector<256x512xf32>
    %cst_25 = arith.constant dense<0.000000e+00> : vector<8x512xf32>
    %28 = tpu.matmul %26, %27, %cst_25 {dimension_numbers = #tpu.dot_dimension_numbers<[1], [0], [0], [1], [0, 0, 1, 1], [], []>} : vector<8x256xf32>, vector<256x512xf32>, vector<8x512xf32> -> vector<8x512xf32>
    %c0_26 = arith.constant 0 : index
    %c0_27 = arith.constant 0 : index
    %29 = vector.load %arg11[%c0_26, %c0_27] : memref<1x512xf32, #tpu.memory_space<vmem>>, vector<1x512xf32>
    %30 = vector.broadcast %29 : vector<1x512xf32> to vector<8x512xf32>
    %31 = arith.addf %28, %30 : vector<8x512xf32>
    %cst_28 = arith.constant 0.000000e+00 : f32
    %32 = vector.broadcast %cst_28 : f32 to vector<8x128xf32>
    %33 = tpu.iota {dimensions = array<i32: 1>} : vector<8x128xi32>
    %34 = tpu.iota {dimensions = array<i32: 1>} : vector<8x128xi32>
    %35 = vector.extract_strided_slice %31 {offsets = [0, 0], sizes = [8, 128], strides = [1, 1]} : vector<8x512xf32> to vector<8x128xf32>
    %cst_29 = arith.constant 0.000000e+00 : f32
    %36 = vector.broadcast %cst_29 : f32 to vector<8x128xf32>
    %37 = arith.maximumf %35, %36 : vector<8x128xf32>
    %c0_30 = arith.constant 0 : index
    %c0_31 = arith.constant 0 : index
    %c0_32 = arith.constant 0 : index
    %38 = vector.load %arg13[%c0_30, %c0_31, %c0_32] : memref<4x128x128xf32, #tpu.memory_space<vmem>>, vector<1x128x128xf32>
    %39 = vector.shape_cast %38 : vector<1x128x128xf32> to vector<128x128xf32>
    %cst_33 = arith.constant dense<0.000000e+00> : vector<8x128xf32>
    %40 = tpu.matmul %37, %39, %cst_33 {dimension_numbers = #tpu.dot_dimension_numbers<[1], [0], [0], [1], [0, 0, 1, 1], [], []>} : vector<8x128xf32>, vector<128x128xf32>, vector<8x128xf32> -> vector<8x128xf32>
    %c0_34 = arith.constant 0 : index
    %c0_35 = arith.constant 0 : index
    %c0_36 = arith.constant 0 : index
    %41 = vector.load %arg14[%c0_34, %c0_35, %c0_36] : memref<4x1x128xf32, #tpu.memory_space<vmem>>, vector<1x1x128xf32>
    %42 = vector.shape_cast %41 : vector<1x1x128xf32> to vector<1x128xf32>
    %43 = vector.broadcast %42 : vector<1x128xf32> to vector<8x128xf32>
    %44 = arith.addf %40, %43 : vector<8x128xf32>
    %c0_37 = arith.constant 0 : index
    %c0_38 = arith.constant 0 : index
    %c0_39 = arith.constant 0 : index
    %45 = vector.load %arg17[%c0_37, %c0_38, %c0_39] : memref<4x8x128xf32, #tpu.memory_space<vmem>>, vector<1x8x128xf32>
    %46 = vector.shape_cast %45 : vector<1x8x128xf32> to vector<8x128xf32>
    %47 = arith.addf %44, %46 : vector<8x128xf32>
    %cst_40 = arith.constant dense<0xFF800000> : vector<8xf32>
    %48 = vector.multi_reduction <maximumf>, %47, %cst_40 [1] : vector<8x128xf32> to vector<8xf32>
    %49 = vector.shape_cast %48 : vector<8xf32> to vector<8x1xf32>
    %50 = vector.broadcast %49 : vector<8x1xf32> to vector<8x128xf32>
    %51 = arith.cmpf oge, %47, %50 : vector<8x128xf32>
    %c128_i32 = arith.constant 128 : i32
    %52 = vector.broadcast %c128_i32 : i32 to vector<8x128xi32>
    %53 = arith.select %51, %34, %52 : vector<8x128xi1>, vector<8x128xi32>
    %cst_41 = arith.constant dense<2147483647> : vector<8xi32>
    %54 = vector.multi_reduction <minsi>, %53, %cst_41 [1] : vector<8x128xi32> to vector<8xi32>
    %55 = vector.shape_cast %54 : vector<8xi32> to vector<8x1xi32>
    %56 = arith.sitofp %55 : vector<8x1xi32> to vector<8x1xf32>
    %c0_42 = arith.constant 0 : index
    %c0_43 = arith.constant 0 : index
    %c0_44 = arith.constant 0 : index
    %57 = vector.load %arg18[%c0_42, %c0_43, %c0_44] : memref<4x8x1xf32, #tpu.memory_space<vmem>>, vector<1x8x1xf32>
    %58 = vector.shape_cast %57 : vector<1x8x1xf32> to vector<8x1xf32>
    %59 = arith.addf %56, %58 : vector<8x1xf32>
    %cst_45 = arith.constant 2.500000e-02 : f32
    %60 = vector.broadcast %cst_45 : f32 to vector<8x1xf32>
    %61 = arith.mulf %59, %60 : vector<8x1xf32>
    %cst_46 = arith.constant -1.000000e+00 : f32
    %62 = vector.broadcast %cst_46 : f32 to vector<8x1xf32>
    %63 = arith.addf %62, %61 : vector<8x1xf32>
    %c0_i32 = arith.constant 0 : i32
    %64 = vector.broadcast %c0_i32 : i32 to vector<8x128xi32>
    %65 = arith.cmpi eq, %33, %64 : vector<8x128xi32>
    %66 = vector.shape_cast %63 : vector<8x1xf32> to vector<8x1xf32>
    %67 = vector.broadcast %66 : vector<8x1xf32> to vector<8x128xf32>
    %68 = arith.select %65, %67, %32 : vector<8x128xi1>, vector<8x128xf32>
    %69 = vector.extract_strided_slice %31 {offsets = [0, 128], sizes = [8, 128], strides = [1, 1]} : vector<8x512xf32> to vector<8x128xf32>
    %c0_47 = arith.constant 0 : index
    %c0_48 = arith.constant 0 : index
    %c0_49 = arith.constant 0 : index
    %70 = vector.load %arg15[%c0_47, %c0_48, %c0_49] : memref<3x4x128xf32, #tpu.memory_space<vmem>>, vector<1x4x128xf32>
    %71 = vector.shape_cast %70 : vector<1x4x128xf32> to vector<4x128xf32>
    %c0_50 = arith.constant 0 : index
    %c0_51 = arith.constant 0 : index
    %c0_52 = arith.constant 0 : index
    %72 = vector.load %arg16[%c0_50, %c0_51, %c0_52] : memref<3x1x128xf32, #tpu.memory_space<vmem>>, vector<1x1x128xf32>
    %73 = vector.shape_cast %72 : vector<1x1x128xf32> to vector<1x128xf32>
    %74 = vector.extract_strided_slice %71 {offsets = [0, 0], sizes = [1, 128], strides = [1, 1]} : vector<4x128xf32> to vector<1x128xf32>
    %75 = vector.broadcast %63 : vector<8x1xf32> to vector<8x128xf32>
    %76 = vector.broadcast %74 : vector<1x128xf32> to vector<8x128xf32>
    %77 = arith.mulf %75, %76 : vector<8x128xf32>
    %78 = vector.broadcast %73 : vector<1x128xf32> to vector<8x128xf32>
    %79 = arith.addf %78, %77 : vector<8x128xf32>
    %c0_53 = arith.constant 0 : index
    %c0_54 = arith.constant 0 : index
    %c0_55 = arith.constant 0 : index
    %80 = vector.load %arg12[%c0_53, %c0_54, %c0_55] : memref<3x128x128xf32, #tpu.memory_space<vmem>>, vector<1x128x128xf32>
    %81 = vector.shape_cast %80 : vector<1x128x128xf32> to vector<128x128xf32>
    %cst_56 = arith.constant dense<0.000000e+00> : vector<8x128xf32>
    %82 = tpu.matmul %79, %81, %cst_56 {dimension_numbers = #tpu.dot_dimension_numbers<[1], [0], [0], [1], [0, 0, 1, 1], [], []>} : vector<8x128xf32>, vector<128x128xf32>, vector<8x128xf32> -> vector<8x128xf32>
    %83 = arith.addf %69, %82 : vector<8x128xf32>
    %cst_57 = arith.constant 0.000000e+00 : f32
    %84 = vector.broadcast %cst_57 : f32 to vector<8x128xf32>
    %85 = arith.maximumf %83, %84 : vector<8x128xf32>
    %c1 = arith.constant 1 : index
    %c0_58 = arith.constant 0 : index
    %c0_59 = arith.constant 0 : index
    %86 = vector.load %arg13[%c1, %c0_58, %c0_59] : memref<4x128x128xf32, #tpu.memory_space<vmem>>, vector<1x128x128xf32>
    %87 = vector.shape_cast %86 : vector<1x128x128xf32> to vector<128x128xf32>
    %cst_60 = arith.constant dense<0.000000e+00> : vector<8x128xf32>
    %88 = tpu.matmul %85, %87, %cst_60 {dimension_numbers = #tpu.dot_dimension_numbers<[1], [0], [0], [1], [0, 0, 1, 1], [], []>} : vector<8x128xf32>, vector<128x128xf32>, vector<8x128xf32> -> vector<8x128xf32>
    %c1_61 = arith.constant 1 : index
    %c0_62 = arith.constant 0 : index
    %c0_63 = arith.constant 0 : index
    %89 = vector.load %arg14[%c1_61, %c0_62, %c0_63] : memref<4x1x128xf32, #tpu.memory_space<vmem>>, vector<1x1x128xf32>
    %90 = vector.shape_cast %89 : vector<1x1x128xf32> to vector<1x128xf32>
    %91 = vector.broadcast %90 : vector<1x128xf32> to vector<8x128xf32>
    %92 = arith.addf %88, %91 : vector<8x128xf32>
    %c1_64 = arith.constant 1 : index
    %c0_65 = arith.constant 0 : index
    %c0_66 = arith.constant 0 : index
    %93 = vector.load %arg17[%c1_64, %c0_65, %c0_66] : memref<4x8x128xf32, #tpu.memory_space<vmem>>, vector<1x8x128xf32>
    %94 = vector.shape_cast %93 : vector<1x8x128xf32> to vector<8x128xf32>
    %95 = arith.addf %92, %94 : vector<8x128xf32>
    %cst_67 = arith.constant dense<0xFF800000> : vector<8xf32>
    %96 = vector.multi_reduction <maximumf>, %95, %cst_67 [1] : vector<8x128xf32> to vector<8xf32>
    %97 = vector.shape_cast %96 : vector<8xf32> to vector<8x1xf32>
    %98 = vector.broadcast %97 : vector<8x1xf32> to vector<8x128xf32>
    %99 = arith.cmpf oge, %95, %98 : vector<8x128xf32>
    %c128_i32_68 = arith.constant 128 : i32
    %100 = vector.broadcast %c128_i32_68 : i32 to vector<8x128xi32>
    %101 = arith.select %99, %34, %100 : vector<8x128xi1>, vector<8x128xi32>
    %cst_69 = arith.constant dense<2147483647> : vector<8xi32>
    %102 = vector.multi_reduction <minsi>, %101, %cst_69 [1] : vector<8x128xi32> to vector<8xi32>
    %103 = vector.shape_cast %102 : vector<8xi32> to vector<8x1xi32>
    %104 = arith.sitofp %103 : vector<8x1xi32> to vector<8x1xf32>
    %c1_70 = arith.constant 1 : index
    %c0_71 = arith.constant 0 : index
    %c0_72 = arith.constant 0 : index
    %105 = vector.load %arg18[%c1_70, %c0_71, %c0_72] : memref<4x8x1xf32, #tpu.memory_space<vmem>>, vector<1x8x1xf32>
    %106 = vector.shape_cast %105 : vector<1x8x1xf32> to vector<8x1xf32>
    %107 = arith.addf %104, %106 : vector<8x1xf32>
    %cst_73 = arith.constant 2.500000e-02 : f32
    %108 = vector.broadcast %cst_73 : f32 to vector<8x1xf32>
    %109 = arith.mulf %107, %108 : vector<8x1xf32>
    %cst_74 = arith.constant -1.000000e+00 : f32
    %110 = vector.broadcast %cst_74 : f32 to vector<8x1xf32>
    %111 = arith.addf %110, %109 : vector<8x1xf32>
    %c1_i32 = arith.constant 1 : i32
    %112 = vector.broadcast %c1_i32 : i32 to vector<8x128xi32>
    %113 = arith.cmpi eq, %33, %112 : vector<8x128xi32>
    %114 = vector.shape_cast %111 : vector<8x1xf32> to vector<8x1xf32>
    %115 = vector.broadcast %114 : vector<8x1xf32> to vector<8x128xf32>
    %116 = arith.select %113, %115, %68 : vector<8x128xi1>, vector<8x128xf32>
    %117 = vector.extract_strided_slice %31 {offsets = [0, 256], sizes = [8, 128], strides = [1, 1]} : vector<8x512xf32> to vector<8x128xf32>
    %c1_75 = arith.constant 1 : index
    %c0_76 = arith.constant 0 : index
    %c0_77 = arith.constant 0 : index
    %118 = vector.load %arg15[%c1_75, %c0_76, %c0_77] : memref<3x4x128xf32, #tpu.memory_space<vmem>>, vector<1x4x128xf32>
    %119 = vector.shape_cast %118 : vector<1x4x128xf32> to vector<4x128xf32>
    %c1_78 = arith.constant 1 : index
    %c0_79 = arith.constant 0 : index
    %c0_80 = arith.constant 0 : index
    %120 = vector.load %arg16[%c1_78, %c0_79, %c0_80] : memref<3x1x128xf32, #tpu.memory_space<vmem>>, vector<1x1x128xf32>
    %121 = vector.shape_cast %120 : vector<1x1x128xf32> to vector<1x128xf32>
    %122 = vector.extract_strided_slice %119 {offsets = [0, 0], sizes = [1, 128], strides = [1, 1]} : vector<4x128xf32> to vector<1x128xf32>
    %123 = vector.broadcast %63 : vector<8x1xf32> to vector<8x128xf32>
    %124 = vector.broadcast %122 : vector<1x128xf32> to vector<8x128xf32>
    %125 = arith.mulf %123, %124 : vector<8x128xf32>
    %126 = vector.broadcast %121 : vector<1x128xf32> to vector<8x128xf32>
    %127 = arith.addf %126, %125 : vector<8x128xf32>
    %128 = vector.extract_strided_slice %119 {offsets = [1, 0], sizes = [1, 128], strides = [1, 1]} : vector<4x128xf32> to vector<1x128xf32>
    %129 = vector.broadcast %111 : vector<8x1xf32> to vector<8x128xf32>
    %130 = vector.broadcast %128 : vector<1x128xf32> to vector<8x128xf32>
    %131 = arith.mulf %129, %130 : vector<8x128xf32>
    %132 = arith.addf %127, %131 : vector<8x128xf32>
    %c1_81 = arith.constant 1 : index
    %c0_82 = arith.constant 0 : index
    %c0_83 = arith.constant 0 : index
    %133 = vector.load %arg12[%c1_81, %c0_82, %c0_83] : memref<3x128x128xf32, #tpu.memory_space<vmem>>, vector<1x128x128xf32>
    %134 = vector.shape_cast %133 : vector<1x128x128xf32> to vector<128x128xf32>
    %cst_84 = arith.constant dense<0.000000e+00> : vector<8x128xf32>
    %135 = tpu.matmul %132, %134, %cst_84 {dimension_numbers = #tpu.dot_dimension_numbers<[1], [0], [0], [1], [0, 0, 1, 1], [], []>} : vector<8x128xf32>, vector<128x128xf32>, vector<8x128xf32> -> vector<8x128xf32>
    %136 = arith.addf %117, %135 : vector<8x128xf32>
    %cst_85 = arith.constant 0.000000e+00 : f32
    %137 = vector.broadcast %cst_85 : f32 to vector<8x128xf32>
    %138 = arith.maximumf %136, %137 : vector<8x128xf32>
    %c2 = arith.constant 2 : index
    %c0_86 = arith.constant 0 : index
    %c0_87 = arith.constant 0 : index
    %139 = vector.load %arg13[%c2, %c0_86, %c0_87] : memref<4x128x128xf32, #tpu.memory_space<vmem>>, vector<1x128x128xf32>
    %140 = vector.shape_cast %139 : vector<1x128x128xf32> to vector<128x128xf32>
    %cst_88 = arith.constant dense<0.000000e+00> : vector<8x128xf32>
    %141 = tpu.matmul %138, %140, %cst_88 {dimension_numbers = #tpu.dot_dimension_numbers<[1], [0], [0], [1], [0, 0, 1, 1], [], []>} : vector<8x128xf32>, vector<128x128xf32>, vector<8x128xf32> -> vector<8x128xf32>
    %c2_89 = arith.constant 2 : index
    %c0_90 = arith.constant 0 : index
    %c0_91 = arith.constant 0 : index
    %142 = vector.load %arg14[%c2_89, %c0_90, %c0_91] : memref<4x1x128xf32, #tpu.memory_space<vmem>>, vector<1x1x128xf32>
    %143 = vector.shape_cast %142 : vector<1x1x128xf32> to vector<1x128xf32>
    %144 = vector.broadcast %143 : vector<1x128xf32> to vector<8x128xf32>
    %145 = arith.addf %141, %144 : vector<8x128xf32>
    %c2_92 = arith.constant 2 : index
    %c0_93 = arith.constant 0 : index
    %c0_94 = arith.constant 0 : index
    %146 = vector.load %arg17[%c2_92, %c0_93, %c0_94] : memref<4x8x128xf32, #tpu.memory_space<vmem>>, vector<1x8x128xf32>
    %147 = vector.shape_cast %146 : vector<1x8x128xf32> to vector<8x128xf32>
    %148 = arith.addf %145, %147 : vector<8x128xf32>
    %cst_95 = arith.constant dense<0xFF800000> : vector<8xf32>
    %149 = vector.multi_reduction <maximumf>, %148, %cst_95 [1] : vector<8x128xf32> to vector<8xf32>
    %150 = vector.shape_cast %149 : vector<8xf32> to vector<8x1xf32>
    %151 = vector.broadcast %150 : vector<8x1xf32> to vector<8x128xf32>
    %152 = arith.cmpf oge, %148, %151 : vector<8x128xf32>
    %c128_i32_96 = arith.constant 128 : i32
    %153 = vector.broadcast %c128_i32_96 : i32 to vector<8x128xi32>
    %154 = arith.select %152, %34, %153 : vector<8x128xi1>, vector<8x128xi32>
    %cst_97 = arith.constant dense<2147483647> : vector<8xi32>
    %155 = vector.multi_reduction <minsi>, %154, %cst_97 [1] : vector<8x128xi32> to vector<8xi32>
    %156 = vector.shape_cast %155 : vector<8xi32> to vector<8x1xi32>
    %157 = arith.sitofp %156 : vector<8x1xi32> to vector<8x1xf32>
    %c2_98 = arith.constant 2 : index
    %c0_99 = arith.constant 0 : index
    %c0_100 = arith.constant 0 : index
    %158 = vector.load %arg18[%c2_98, %c0_99, %c0_100] : memref<4x8x1xf32, #tpu.memory_space<vmem>>, vector<1x8x1xf32>
    %159 = vector.shape_cast %158 : vector<1x8x1xf32> to vector<8x1xf32>
    %160 = arith.addf %157, %159 : vector<8x1xf32>
    %cst_101 = arith.constant 2.500000e-02 : f32
    %161 = vector.broadcast %cst_101 : f32 to vector<8x1xf32>
    %162 = arith.mulf %160, %161 : vector<8x1xf32>
    %cst_102 = arith.constant -1.000000e+00 : f32
    %163 = vector.broadcast %cst_102 : f32 to vector<8x1xf32>
    %164 = arith.addf %163, %162 : vector<8x1xf32>
    %c2_i32 = arith.constant 2 : i32
    %165 = vector.broadcast %c2_i32 : i32 to vector<8x128xi32>
    %166 = arith.cmpi eq, %33, %165 : vector<8x128xi32>
    %167 = vector.shape_cast %164 : vector<8x1xf32> to vector<8x1xf32>
    %168 = vector.broadcast %167 : vector<8x1xf32> to vector<8x128xf32>
    %169 = arith.select %166, %168, %116 : vector<8x128xi1>, vector<8x128xf32>
    %170 = vector.extract_strided_slice %31 {offsets = [0, 384], sizes = [8, 128], strides = [1, 1]} : vector<8x512xf32> to vector<8x128xf32>
    %c2_103 = arith.constant 2 : index
    %c0_104 = arith.constant 0 : index
    %c0_105 = arith.constant 0 : index
    %171 = vector.load %arg15[%c2_103, %c0_104, %c0_105] : memref<3x4x128xf32, #tpu.memory_space<vmem>>, vector<1x4x128xf32>
    %172 = vector.shape_cast %171 : vector<1x4x128xf32> to vector<4x128xf32>
    %c2_106 = arith.constant 2 : index
    %c0_107 = arith.constant 0 : index
    %c0_108 = arith.constant 0 : index
    %173 = vector.load %arg16[%c2_106, %c0_107, %c0_108] : memref<3x1x128xf32, #tpu.memory_space<vmem>>, vector<1x1x128xf32>
    %174 = vector.shape_cast %173 : vector<1x1x128xf32> to vector<1x128xf32>
    %175 = vector.extract_strided_slice %172 {offsets = [0, 0], sizes = [1, 128], strides = [1, 1]} : vector<4x128xf32> to vector<1x128xf32>
    %176 = vector.broadcast %63 : vector<8x1xf32> to vector<8x128xf32>
    %177 = vector.broadcast %175 : vector<1x128xf32> to vector<8x128xf32>
    %178 = arith.mulf %176, %177 : vector<8x128xf32>
    %179 = vector.broadcast %174 : vector<1x128xf32> to vector<8x128xf32>
    %180 = arith.addf %179, %178 : vector<8x128xf32>
    %181 = vector.extract_strided_slice %172 {offsets = [1, 0], sizes = [1, 128], strides = [1, 1]} : vector<4x128xf32> to vector<1x128xf32>
    %182 = vector.broadcast %111 : vector<8x1xf32> to vector<8x128xf32>
    %183 = vector.broadcast %181 : vector<1x128xf32> to vector<8x128xf32>
    %184 = arith.mulf %182, %183 : vector<8x128xf32>
    %185 = arith.addf %180, %184 : vector<8x128xf32>
    %186 = vector.extract_strided_slice %172 {offsets = [2, 0], sizes = [1, 128], strides = [1, 1]} : vector<4x128xf32> to vector<1x128xf32>
    %187 = vector.broadcast %164 : vector<8x1xf32> to vector<8x128xf32>
    %188 = vector.broadcast %186 : vector<1x128xf32> to vector<8x128xf32>
    %189 = arith.mulf %187, %188 : vector<8x128xf32>
    %190 = arith.addf %185, %189 : vector<8x128xf32>
    %c2_109 = arith.constant 2 : index
    %c0_110 = arith.constant 0 : index
    %c0_111 = arith.constant 0 : index
    %191 = vector.load %arg12[%c2_109, %c0_110, %c0_111] : memref<3x128x128xf32, #tpu.memory_space<vmem>>, vector<1x128x128xf32>
    %192 = vector.shape_cast %191 : vector<1x128x128xf32> to vector<128x128xf32>
    %cst_112 = arith.constant dense<0.000000e+00> : vector<8x128xf32>
    %193 = tpu.matmul %190, %192, %cst_112 {dimension_numbers = #tpu.dot_dimension_numbers<[1], [0], [0], [1], [0, 0, 1, 1], [], []>} : vector<8x128xf32>, vector<128x128xf32>, vector<8x128xf32> -> vector<8x128xf32>
    %194 = arith.addf %170, %193 : vector<8x128xf32>
    %cst_113 = arith.constant 0.000000e+00 : f32
    %195 = vector.broadcast %cst_113 : f32 to vector<8x128xf32>
    %196 = arith.maximumf %194, %195 : vector<8x128xf32>
    %c3 = arith.constant 3 : index
    %c0_114 = arith.constant 0 : index
    %c0_115 = arith.constant 0 : index
    %197 = vector.load %arg13[%c3, %c0_114, %c0_115] : memref<4x128x128xf32, #tpu.memory_space<vmem>>, vector<1x128x128xf32>
    %198 = vector.shape_cast %197 : vector<1x128x128xf32> to vector<128x128xf32>
    %cst_116 = arith.constant dense<0.000000e+00> : vector<8x128xf32>
    %199 = tpu.matmul %196, %198, %cst_116 {dimension_numbers = #tpu.dot_dimension_numbers<[1], [0], [0], [1], [0, 0, 1, 1], [], []>} : vector<8x128xf32>, vector<128x128xf32>, vector<8x128xf32> -> vector<8x128xf32>
    %c3_117 = arith.constant 3 : index
    %c0_118 = arith.constant 0 : index
    %c0_119 = arith.constant 0 : index
    %200 = vector.load %arg14[%c3_117, %c0_118, %c0_119] : memref<4x1x128xf32, #tpu.memory_space<vmem>>, vector<1x1x128xf32>
    %201 = vector.shape_cast %200 : vector<1x1x128xf32> to vector<1x128xf32>
    %202 = vector.broadcast %201 : vector<1x128xf32> to vector<8x128xf32>
    %203 = arith.addf %199, %202 : vector<8x128xf32>
    %c3_120 = arith.constant 3 : index
    %c0_121 = arith.constant 0 : index
    %c0_122 = arith.constant 0 : index
    %204 = vector.load %arg17[%c3_120, %c0_121, %c0_122] : memref<4x8x128xf32, #tpu.memory_space<vmem>>, vector<1x8x128xf32>
    %205 = vector.shape_cast %204 : vector<1x8x128xf32> to vector<8x128xf32>
    %206 = arith.addf %203, %205 : vector<8x128xf32>
    %cst_123 = arith.constant dense<0xFF800000> : vector<8xf32>
    %207 = vector.multi_reduction <maximumf>, %206, %cst_123 [1] : vector<8x128xf32> to vector<8xf32>
    %208 = vector.shape_cast %207 : vector<8xf32> to vector<8x1xf32>
    %209 = vector.broadcast %208 : vector<8x1xf32> to vector<8x128xf32>
    %210 = arith.cmpf oge, %206, %209 : vector<8x128xf32>
    %c128_i32_124 = arith.constant 128 : i32
    %211 = vector.broadcast %c128_i32_124 : i32 to vector<8x128xi32>
    %212 = arith.select %210, %34, %211 : vector<8x128xi1>, vector<8x128xi32>
    %cst_125 = arith.constant dense<2147483647> : vector<8xi32>
    %213 = vector.multi_reduction <minsi>, %212, %cst_125 [1] : vector<8x128xi32> to vector<8xi32>
    %214 = vector.shape_cast %213 : vector<8xi32> to vector<8x1xi32>
    %215 = arith.sitofp %214 : vector<8x1xi32> to vector<8x1xf32>
    %c3_126 = arith.constant 3 : index
    %c0_127 = arith.constant 0 : index
    %c0_128 = arith.constant 0 : index
    %216 = vector.load %arg18[%c3_126, %c0_127, %c0_128] : memref<4x8x1xf32, #tpu.memory_space<vmem>>, vector<1x8x1xf32>
    %217 = vector.shape_cast %216 : vector<1x8x1xf32> to vector<8x1xf32>
    %218 = arith.addf %215, %217 : vector<8x1xf32>
    %cst_129 = arith.constant 2.500000e-02 : f32
    %219 = vector.broadcast %cst_129 : f32 to vector<8x1xf32>
    %220 = arith.mulf %218, %219 : vector<8x1xf32>
    %cst_130 = arith.constant -1.000000e+00 : f32
    %221 = vector.broadcast %cst_130 : f32 to vector<8x1xf32>
    %222 = arith.addf %221, %220 : vector<8x1xf32>
    %c3_i32 = arith.constant 3 : i32
    %223 = vector.broadcast %c3_i32 : i32 to vector<8x128xi32>
    %224 = arith.cmpi eq, %33, %223 : vector<8x128xi32>
    %225 = vector.shape_cast %222 : vector<8x1xf32> to vector<8x1xf32>
    %226 = vector.broadcast %225 : vector<8x1xf32> to vector<8x128xf32>
    %227 = arith.select %224, %226, %169 : vector<8x128xi1>, vector<8x128xf32>
    %c0_131 = arith.constant 0 : index
    %c0_132 = arith.constant 0 : index
    %228 = vector.load %arg19[%c0_131, %c0_132] : memref<8x128xf32, #tpu.memory_space<vmem>>, vector<8x128xf32>
    tpu.vector_store %arg19[%c0_131, %c0_132], %227 {strides = array<i32>} : memref<8x128xf32, #tpu.memory_space<vmem>>, vector<8x128xf32>,
    return
  }
  func.func @transform_0(%arg0: i32) -> (i32, i32) {
    %c0_i32 = arith.constant 0 : i32
    %c0_i32_0 = arith.constant 0 : i32
    return %arg0, %c0_i32 : i32, i32
  }
  func.func @transform_1(%arg0: i32) -> (i32, i32) {
    %c0_i32 = arith.constant 0 : i32
    %c0_i32_0 = arith.constant 0 : i32
    %c0_i32_1 = arith.constant 0 : i32
    return %c0_i32, %c0_i32_0 : i32, i32
  }
  func.func @transform_2(%arg0: i32) -> (i32, i32) {
    %c0_i32 = arith.constant 0 : i32
    %c0_i32_0 = arith.constant 0 : i32
    %c0_i32_1 = arith.constant 0 : i32
    return %c0_i32, %c0_i32_0 : i32, i32
  }
  func.func @transform_3(%arg0: i32) -> (i32, i32) {
    %c0_i32 = arith.constant 0 : i32
    %c0_i32_0 = arith.constant 0 : i32
    %c0_i32_1 = arith.constant 0 : i32
    return %c0_i32, %c0_i32_0 : i32, i32
  }
  func.func @transform_4(%arg0: i32) -> (i32, i32) {
    %c0_i32 = arith.constant 0 : i32
    %c0_i32_0 = arith.constant 0 : i32
    %c0_i32_1 = arith.constant 0 : i32
    return %c0_i32, %c0_i32_0 : i32, i32
  }
  func.func @transform_5(%arg0: i32) -> (i32, i32) {
    %c0_i32 = arith.constant 0 : i32
    %c0_i32_0 = arith.constant 0 : i32
    %c0_i32_1 = arith.constant 0 : i32
    return %c0_i32, %c0_i32_0 : i32, i32
  }
  func.func @transform_6(%arg0: i32) -> (i32, i32) {
    %c0_i32 = arith.constant 0 : i32
    %c0_i32_0 = arith.constant 0 : i32
    %c0_i32_1 = arith.constant 0 : i32
    return %c0_i32, %c0_i32_0 : i32, i32
  }
  func.func @transform_7(%arg0: i32) -> (i32, i32) {
    %c0_i32 = arith.constant 0 : i32
    %c0_i32_0 = arith.constant 0 : i32
    %c0_i32_1 = arith.constant 0 : i32
    return %c0_i32, %c0_i32_0 : i32, i32
  }
  func.func @transform_8(%arg0: i32) -> (i32, i32) {
    %c0_i32 = arith.constant 0 : i32
    %c0_i32_0 = arith.constant 0 : i32
    %c0_i32_1 = arith.constant 0 : i32
    return %c0_i32, %c0_i32_0 : i32, i32
  }
  func.func @transform_9(%arg0: i32) -> (i32, i32) {
    %c0_i32 = arith.constant 0 : i32
    %c0_i32_0 = arith.constant 0 : i32
    %c0_i32_1 = arith.constant 0 : i32
    return %c0_i32, %c0_i32_0 : i32, i32
  }
  func.func @transform_10(%arg0: i32) -> (i32, i32) {
    %c0_i32 = arith.constant 0 : i32
    %c0_i32_0 = arith.constant 0 : i32
    %c0_i32_1 = arith.constant 0 : i32
    return %c0_i32, %c0_i32_0 : i32, i32
  }
  func.func @transform_11(%arg0: i32) -> (i32, i32, i32) {
    %c0_i32 = arith.constant 0 : i32
    %c0_i32_0 = arith.constant 0 : i32
    %c0_i32_1 = arith.constant 0 : i32
    %c0_i32_2 = arith.constant 0 : i32
    return %c0_i32, %c0_i32_0, %c0_i32_1 : i32, i32, i32
  }
  func.func @transform_12(%arg0: i32) -> (i32, i32, i32) {
    %c0_i32 = arith.constant 0 : i32
    %c0_i32_0 = arith.constant 0 : i32
    %c0_i32_1 = arith.constant 0 : i32
    %c0_i32_2 = arith.constant 0 : i32
    return %c0_i32, %c0_i32_0, %c0_i32_1 : i32, i32, i32
  }
  func.func @transform_13(%arg0: i32) -> (i32, i32, i32) {
    %c0_i32 = arith.constant 0 : i32
    %c0_i32_0 = arith.constant 0 : i32
    %c0_i32_1 = arith.constant 0 : i32
    %c0_i32_2 = arith.constant 0 : i32
    return %c0_i32, %c0_i32_0, %c0_i32_1 : i32, i32, i32
  }
  func.func @transform_14(%arg0: i32) -> (i32, i32, i32) {
    %c0_i32 = arith.constant 0 : i32
    %c0_i32_0 = arith.constant 0 : i32
    %c0_i32_1 = arith.constant 0 : i32
    %c0_i32_2 = arith.constant 0 : i32
    return %c0_i32, %c0_i32_0, %c0_i32_1 : i32, i32, i32
  }
  func.func @transform_15(%arg0: i32) -> (i32, i32, i32) {
    %c0_i32 = arith.constant 0 : i32
    %c0_i32_0 = arith.constant 0 : i32
    %c0_i32_1 = arith.constant 0 : i32
    %c0_i32_2 = arith.constant 0 : i32
    return %c0_i32, %c0_i32_0, %c0_i32_1 : i32, i32, i32
  }
  func.func @transform_16(%arg0: i32) -> (i32, i32, i32) {
    %c0_i32 = arith.constant 0 : i32
    %c0_i32_0 = arith.constant 0 : i32
    %c0_i32_1 = arith.constant 0 : i32
    return %c0_i32, %arg0, %c0_i32_0 : i32, i32, i32
  }
  func.func @transform_17(%arg0: i32) -> (i32, i32, i32) {
    %c0_i32 = arith.constant 0 : i32
    %c0_i32_0 = arith.constant 0 : i32
    %c0_i32_1 = arith.constant 0 : i32
    return %c0_i32, %arg0, %c0_i32_0 : i32, i32, i32
  }
  func.func @transform_18(%arg0: i32) -> (i32, i32) {
    %c0_i32 = arith.constant 0 : i32
    %c0_i32_0 = arith.constant 0 : i32
    return %arg0, %c0_i32 : i32, i32
  }
}

</mosaic_0001>

<bundles_post_ra>
// kernel: tpu_custom_call.1
= control target key start
LH: loop header
LB: loop body
LE: loop exit
PB: predicated region body
PF: predicated region fallthrough
CT: control target
= control target key end

     0   :  { %s3520_s0 = inlined_call_operand.vmem [shape: f32[8,24], index: 0, kind: input, shape index: {}]   ;;  %s3521_s1 = inlined_call_operand.hbm [shape: f32[24,256], index: 1, kind: input, shape index: {}]   ;;  %s3522_s2 = inlined_call_operand.vmem [shape: f32[1,256], index: 2, kind: input, shape index: {}]   ;;  %s3523_s3 = inlined_call_operand.hbm [shape: f32[256,256], index: 3, kind: input, shape index: {}]   ;;  %s3524_s4 = inlined_call_operand.hbm [shape: f32[1,256], index: 4, kind: input, shape index: {}]   ;;  %s3525_s5 = inlined_call_operand.hbm [shape: f32[256,256], index: 5, kind: input, shape index: {}]   ;;  %s3526_s6 = inlined_call_operand.hbm [shape: f32[1,256], index: 6, kind: input, shape index: {}]   ;;  %s3527_s7 = inlined_call_operand.hbm [shape: f32[256,256], index: 7, kind: input, shape index: {}]   ;;  %s3528_s8 = inlined_call_operand.hbm [shape: f32[1,256], index: 8, kind: input, shape index: {}]   ;;  %s3529_s9 = inlined_call_operand.hbm [shape: f32[256,512], index: 9, kind: input, shape index: {}]   ;;  %s3530_s10 = inlined_call_operand.vmem [shape: f32[1,512], index: 10, kind: input, shape index: {}]   ;;  %s3531_s11 = inlined_call_operand.hbm [shape: f32[3,128,128], index: 11, kind: input, shape index: {}]   ;;  %s3532_s12 = inlined_call_operand.hbm [shape: f32[4,128,128], index: 12, kind: input, shape index: {}]   ;;  %s3533_s13 = inlined_call_operand.vmem [shape: f32[4,1,128], index: 13, kind: input, shape index: {}]   ;;  %s3534_s14 = inlined_call_operand.vmem [shape: f32[3,4,128], index: 14, kind: input, shape index: {}]   ;;  %s3535_s15 = inlined_call_operand.vmem [shape: f32[3,1,128], index: 15, kind: input, shape index: {}]   ;;  %s3536_s16 = inlined_call_operand.vmem [shape: f32[4,8,128], index: 16, kind: input, shape index: {}]   ;;  %s3537_s17 = inlined_call_operand.vmem [shape: f32[4,8,1], index: 17, kind: input, shape index: {}]   ;;  %s3538_s18 = inlined_call_operand.hbm [shape: f32[8,128], index: 18, kind: output, shape index: {}]  }
   0x1   :  { %3541 = sst [smem:[#allocation27_spill]] %s3520_s0 }
   0x2   :  { %3542 = sst [smem:[#allocation28_spill]] %s3521_s1 }
   0x3   :  { %3543 = sst [smem:[#allocation29_spill]] %s3522_s2 }
   0x4   :  { %23 = vsyncpa [#allocation3], 0 }
   0x5   :  { %24 = vsyncpa [#allocation6], 0 }
   0x6   :  { %25 = vsyncpa [#allocation9], 0 }
   0x7   :  { %26 = vsyncpa [#allocation12], 0 }
   0x8   :  { %27 = vsyncpa [#allocation15], 0 }
   0x9   :  { %28 = vsyncpa [#allocation18], 0 }
   0xa   :  { %29 = vsyncpa [#allocation4], 0  ;;  %s3045_s27 = smov [#allocation5]   ;;  %s3046_s29 = smov [#allocation8]  }
   0xb   :  { %s51_s28 = sshll.u32 %s3045_s27, 4  ;;  %s73_s30 = sshll.u32 %s3046_s29, 4  ;;  %s52_s28 = int_to_ptr.vmem [resolvable:$true] %s51_s28  ;;  %s3161_s30 = int_to_ptr.vmem [resolvable:$true] %s73_s30 }
   0xc   :  { %s2789_s1 = scalar_lea.hbm %s3523_s3, 8192 }
   0xd   :  { %p2790_p0 = scmp.ne.s32.totalorder %s3523_s3, %s2789_s1  ;;  %p2793_p1 = scmp.lt.u32.totalorder %s2789_s1, %s3523_s3 }
   0xf   :  { %p2795_p2 = pnand %p2793_p1, %p2790_p0 }
  0x11   :  { %2798 = shalt.err (!%p2795_p2)
}
  0x12   :  { %s2799_s23 = scalar_lea.vmem %s52_s28, 8192  ;;  %p2804_p4 = scmp.lt.s32.totalorder %s52_s28, %s52_s28 }
  0x13   :  { %p2800_p3 = scmp.ne.s32.totalorder %s52_s28, %s2799_s23  ;;  %p2805_p5 = scmp.lt.s32.totalorder %s2799_s23, %s2799_s23 }
  0x15   :  { %p2806_p6 = por %p2805_p5, %p2804_p4 }
  0x17   :  { %p2807_p7 = pnand %p2806_p6, %p2800_p3 }
  0x19   :  { %2810 = shalt.err (!%p2807_p7)
}
  0x1a   :  { %s3540_s24 = smov 256   ;;  %s3048_s25 = smov 16  }
  0x1b   :  { %57 = dma.hbm_to_vmem [thread:$0]  %s3523_s3, 8192, %s52_s28, [#allocation6], %s3540_s24, %s3540_s24, %s3048_s25  }
  0x1c   :  { %s2811_s19 = scalar_lea.hbm %s3525_s5, 8192 }
  0x1d   :  { %p2812_p8 = scmp.ne.s32.totalorder %s3525_s5, %s2811_s19  ;;  %p2815_p9 = scmp.lt.u32.totalorder %s2811_s19, %s3525_s5 }
  0x1f   :  { %p2817_p10 = pnand %p2815_p9, %p2812_p8 }
  0x21   :  { %2820 = shalt.err (!%p2817_p10)
}
  0x22   :  { %s2821_s2 = scalar_lea.vmem %s3161_s30, 8192  ;;  %p2826_p12 = scmp.lt.s32.totalorder %s3161_s30, %s3161_s30 }
  0x23   :  { %p2822_p11 = scmp.ne.s32.totalorder %s3161_s30, %s2821_s2  ;;  %p2827_p13 = scmp.lt.s32.totalorder %s2821_s2, %s2821_s2 }
  0x25   :  { %p2828_p0 = por %p2827_p13, %p2826_p12 }
  0x27   :  { %p2829_p1 = pnand %p2828_p0, %p2822_p11 }
  0x29   :  { %2832 = shalt.err (!%p2829_p1)
}
  0x2a   :  { %79 = dma.hbm_to_vmem [thread:$0]  %s3525_s5, 8192, %s3161_s30, [#allocation9], %s3540_s24, %s3540_s24, %s3048_s25  }
  0x2b   :  { %s3049_s23 = smov [#allocation11]   ;;  %s3050_s27 = smov [#allocation14]  }
  0x2c   :  { %s95_s26 = sshll.u32 %s3049_s23, 4  ;;  %s117_s29 = sshll.u32 %s3050_s27, 4  ;;  %s96_s26 = int_to_ptr.vmem [resolvable:$true] %s95_s26  ;;  %s3198_s29 = int_to_ptr.vmem [resolvable:$true] %s117_s29 }
  0x2d   :  { %s2833_s1 = scalar_lea.hbm %s3527_s7, 8192 }
  0x2e   :  { %p2834_p2 = scmp.ne.s32.totalorder %s3527_s7, %s2833_s1  ;;  %p2837_p3 = scmp.lt.u32.totalorder %s2833_s1, %s3527_s7 }
  0x30   :  { %p2839_p4 = pnand %p2837_p3, %p2834_p2 }
  0x32   :  { %2842 = shalt.err (!%p2839_p4)
}
  0x33   :  { %s2843_s5 = scalar_lea.vmem %s96_s26, 8192  ;;  %p2848_p6 = scmp.lt.s32.totalorder %s96_s26, %s96_s26 }
  0x34   :  { %p2844_p5 = scmp.ne.s32.totalorder %s96_s26, %s2843_s5  ;;  %p2849_p7 = scmp.lt.s32.totalorder %s2843_s5, %s2843_s5 }
  0x36   :  { %p2850_p8 = por %p2849_p7, %p2848_p6 }
  0x38   :  { %p2851_p9 = pnand %p2850_p8, %p2844_p5 }
  0x3a   :  { %2854 = shalt.err (!%p2851_p9)
}
  0x3b   :  { %101 = dma.hbm_to_vmem [thread:$0]  %s3527_s7, 8192, %s96_s26, [#allocation12], %s3540_s24, %s3540_s24, %s3048_s25  }
  0x3c   :  { %s2855_s27 = scalar_lea.hbm %s3529_s9, 16384 }
  0x3d   :  { %p2856_p10 = scmp.ne.s32.totalorder %s3529_s9, %s2855_s27  ;;  %p2859_p11 = scmp.lt.u32.totalorder %s2855_s27, %s3529_s9 }
  0x3f   :  { %p2861_p12 = pnand %p2859_p11, %p2856_p10 }
  0x41   :  { %2864 = shalt.err (!%p2861_p12)
}
  0x42   :  { %s2865_s21 = scalar_lea.vmem %s3198_s29, 16384  ;;  %p2870_p0 = scmp.lt.s32.totalorder %s3198_s29, %s3198_s29 }
  0x43   :  { %p2866_p13 = scmp.ne.s32.totalorder %s3198_s29, %s2865_s21  ;;  %p2871_p1 = scmp.lt.s32.totalorder %s2865_s21, %s2865_s21 }
  0x45   :  { %p2872_p2 = por %p2871_p1, %p2870_p0 }
  0x47   :  { %p2873_p3 = pnand %p2872_p2, %p2866_p13 }
  0x49   :  { %2876 = shalt.err (!%p2873_p3)
}
  0x4a   :  { %s3051_s7 = smov 512   ;;  %s3052_s26 = smov 32  }
  0x4b   :  { %123 = dma.hbm_to_vmem [thread:$0]  %s3529_s9, 16384, %s3198_s29, [#allocation15], %s3051_s7, %s3051_s7, %s3052_s26  }
  0x4c   :  { %s3053_s5 = smov [#allocation2]   ;;  %s3054_s3 = smov [#allocation7]  }
  0x4d   :  { %s37_s30 = sshll.u32 %s3053_s5, 4  ;;  %s64_s28 = sshll.u32 %s3054_s3, 4  ;;  %s38_s30 = int_to_ptr.vmem [resolvable:$true] %s37_s30  ;;  %s65_s28 = int_to_ptr.vmem [resolvable:$true] %s64_s28 }
  0x4e   :  { %s3544_s0 = sld [smem:[#allocation28_spill]] }
  0x54   :  { %s2877_s19 = scalar_lea.hbm %s3544_s0, 768 }
  0x55   :  { %p2878_p4 = scmp.ne.s32.totalorder %s3544_s0, %s2877_s19  ;;  %p2881_p5 = scmp.lt.u32.totalorder %s2877_s19, %s3544_s0 }
  0x57   :  { %p2883_p6 = pnand %p2881_p5, %p2878_p4 }
  0x59   :  { %2886 = shalt.err (!%p2883_p6)
}
  0x5a   :  { %s2887_s9 = scalar_lea.vmem %s38_s30, 768  ;;  %p2892_p8 = scmp.lt.s32.totalorder %s38_s30, %s38_s30 }
  0x5b   :  { %p2888_p7 = scmp.ne.s32.totalorder %s38_s30, %s2887_s9  ;;  %p2893_p9 = scmp.lt.s32.totalorder %s2887_s9, %s2887_s9 }
  0x5d   :  { %p2894_p10 = por %p2893_p9, %p2892_p8 }
  0x5f   :  { %p2895_p11 = pnand %p2894_p10, %p2888_p7 }
  0x61   :  { %2898 = shalt.err (!%p2895_p11)
}
  0x62   :  { %s3545_s29 = smov 256   ;;  %s2899_s24 = scalar_lea.hbm %s3524_s4, 32 }
  0x63   :  { %43 = dma.hbm_to_vmem [thread:$0]  %s3544_s0, 768, %s38_s30, [#allocation3], %s3545_s29, %s3545_s29, %s3048_s25  }
  0x64   :  { %p2900_p12 = scmp.ne.s32.totalorder %s3524_s4, %s2899_s24  ;;  %p2903_p13 = scmp.lt.u32.totalorder %s2899_s24, %s3524_s4 }
  0x66   :  { %p2905_p0 = pnand %p2903_p13, %p2900_p12 }
  0x68   :  { %2908 = shalt.err (!%p2905_p0)
}
  0x69   :  { %s2909_s19 = scalar_lea.vmem %s65_s28, 32  ;;  %p2914_p2 = scmp.lt.s32.totalorder %s65_s28, %s65_s28 }
  0x6a   :  { %p2910_p1 = scmp.ne.s32.totalorder %s65_s28, %s2909_s19  ;;  %p2915_p3 = scmp.lt.s32.totalorder %s2909_s19, %s2909_s19 }
  0x6c   :  { %p2916_p4 = por %p2915_p3, %p2914_p2 }
  0x6e   :  { %p2917_p5 = pnand %p2916_p4, %p2910_p1 }
  0x70   :  { %2920 = shalt.err (!%p2917_p5)
}
  0x71   :  { %67 = dma.hbm_to_vmem [thread:$0]  %s3524_s4, 32, %s65_s28, [#allocation6]  }
  0x72   :  { %s3055_s0 = smov [#allocation10]   ;;  %s3056_s20 = smov [#allocation13]  }
  0x73   :  { %s86_s1 = sshll.u32 %s3055_s0, 4  ;;  %s108_s21 = sshll.u32 %s3056_s20, 4  ;;  %s87_s1 = int_to_ptr.vmem [resolvable:$true] %s86_s1  ;;  %s109_s21 = int_to_ptr.vmem [resolvable:$true] %s108_s21 }
  0x74   :  { %s2921_s7 = scalar_lea.hbm %s3526_s6, 32 }
  0x75   :  { %p2922_p6 = scmp.ne.s32.totalorder %s3526_s6, %s2921_s7  ;;  %p2925_p7 = scmp.lt.u32.totalorder %s2921_s7, %s3526_s6 }
  0x77   :  { %p2927_p8 = pnand %p2925_p7, %p2922_p6 }
  0x79   :  { %2930 = shalt.err (!%p2927_p8)
}
  0x7a   :  { %s2931_s4 = scalar_lea.vmem %s87_s1, 32  ;;  %p2936_p10 = scmp.lt.s32.totalorder %s87_s1, %s87_s1 }
  0x7b   :  { %p2932_p9 = scmp.ne.s32.totalorder %s87_s1, %s2931_s4  ;;  %p2937_p11 = scmp.lt.s32.totalorder %s2931_s4, %s2931_s4 }
  0x7d   :  { %p2938_p12 = por %p2937_p11, %p2936_p10 }
  0x7f   :  { %p2939_p13 = pnand %p2938_p12, %p2932_p9 }
  0x81   :  { %2942 = shalt.err (!%p2939_p13)
}
  0x82   :  { %89 = dma.hbm_to_vmem [thread:$0]  %s3526_s6, 32, %s87_s1, [#allocation9]  }
  0x83   :  { %s2943_s27 = scalar_lea.hbm %s3528_s8, 32 }
  0x84   :  { %p2944_p0 = scmp.ne.s32.totalorder %s3528_s8, %s2943_s27  ;;  %p2947_p1 = scmp.lt.u32.totalorder %s2943_s27, %s3528_s8 }
  0x86   :  { %p2949_p2 = pnand %p2947_p1, %p2944_p0 }
  0x88   :  { %2952 = shalt.err (!%p2949_p2)
}
  0x89   :  { %s2953_s20 = scalar_lea.vmem %s109_s21, 32  ;;  %p2958_p4 = scmp.lt.s32.totalorder %s109_s21, %s109_s21 }
  0x8a   :  { %p2954_p3 = scmp.ne.s32.totalorder %s109_s21, %s2953_s20  ;;  %p2959_p5 = scmp.lt.s32.totalorder %s2953_s20, %s2953_s20 }
  0x8c   :  { %p2960_p6 = por %p2959_p5, %p2958_p4 }
  0x8e   :  { %p2961_p7 = pnand %p2960_p6, %p2954_p3 }
  0x90   :  { %2964 = shalt.err (!%p2961_p7)
}
  0x91   :  { %111 = dma.hbm_to_vmem [thread:$0]  %s3528_s8, 32, %s109_s21, [#allocation12]  }
  0x92   :  { %s3057_s9 = smov [#allocation16]   ;;  %s2965_s22 = scalar_lea.hbm %s3531_s11, 6144 }
  0x93   :  { %s131_s29 = sshll.u32 %s3057_s9, 4  ;;  %p2966_p8 = scmp.ne.s32.totalorder %s3531_s11, %s2965_s22  ;;  %s132_s29 = int_to_ptr.vmem [resolvable:$true] %s131_s29 }
  0x94   :  { %p2969_p9 = scmp.lt.u32.totalorder %s2965_s22, %s3531_s11 }
  0x96   :  { %p2971_p10 = pnand %p2969_p9, %p2966_p8 }
  0x98   :  { %2974 = shalt.err (!%p2971_p10)
}
  0x99   :  { %s2975_s5 = scalar_lea.vmem %s132_s29, 6144  ;;  %p2980_p12 = scmp.lt.s32.totalorder %s132_s29, %s132_s29 }
  0x9a   :  { %p2976_p11 = scmp.ne.s32.totalorder %s132_s29, %s2975_s5  ;;  %p2981_p13 = scmp.lt.s32.totalorder %s2975_s5, %s2975_s5 }
  0x9c   :  { %p2982_p0 = por %p2981_p13, %p2980_p12 }
  0x9e   :  { %p2983_p1 = pnand %p2982_p0, %p2976_p11 }
  0xa0   :  { %2986 = shalt.err (!%p2983_p1)
}
  0xa1   :  { %s3058_s8 = smov 128   ;;  %s3059_s21 = smov 8  }
  0xa2   :  { %137 = dma.hbm_to_vmem [thread:$0]  %s3531_s11, 6144, %s132_s29, [#allocation15], %s3058_s8, %s3058_s8, %s3059_s21  }
  0xa3   :  { %s3060_s27 = smov [#allocation17]   ;;  %s2987_s0 = scalar_lea.hbm %s3532_s12, 8192 }
  0xa4   :  { %s143_s19 = sshll.u32 %s3060_s27, 4  ;;  %p2988_p2 = scmp.ne.s32.totalorder %s3532_s12, %s2987_s0  ;;  %s144_s19 = int_to_ptr.vmem [resolvable:$true] %s143_s19 }
  0xa5   :  { %p2991_p3 = scmp.lt.u32.totalorder %s2987_s0, %s3532_s12 }
  0xa7   :  { %p2993_p4 = pnand %p2991_p3, %p2988_p2 }
  0xa9   :  { %2996 = shalt.err (!%p2993_p4)
}
  0xaa   :  { %s2997_s7 = scalar_lea.vmem %s144_s19, 8192  ;;  %p3002_p6 = scmp.lt.s32.totalorder %s144_s19, %s144_s19 }
  0xab   :  { %p2998_p5 = scmp.ne.s32.totalorder %s144_s19, %s2997_s7  ;;  %p3003_p7 = scmp.lt.s32.totalorder %s2997_s7, %s2997_s7 }
  0xad   :  { %p3004_p8 = por %p3003_p7, %p3002_p6 }
  0xaf   :  { %p3005_p9 = pnand %p3004_p8, %p2998_p5 }
  0xb1   :  { %3008 = shalt.err (!%p3005_p9)
}
  0xb2   :  { %149 = dma.hbm_to_vmem [thread:$0]  %s3532_s12, 8192, %s144_s19, [#allocation18], %s3058_s8, %s3058_s8, %s3059_s21  }
  0xb3   :  { %3031 = dma.done.wait [#allocation3], 768  }
  0xb4   :  { %3032 = vsyncadd [#allocation3], 4294966528 }
  0xb5   :  { %3033 = dma.done.wait [#allocation6], 8224  }
  0xb6   :  { %3034 = vsyncadd [#allocation6], 4294959072 }
  0xb7   :  { %3035 = dma.done.wait [#allocation9], 8224  }
  0xb8   :  { %3036 = vsyncadd [#allocation9], 4294959072 }
  0xb9   :  { %3037 = dma.done.wait [#allocation12], 8224  }
  0xba   :  { %3038 = vsyncadd [#allocation12], 4294959072 }
  0xbb   :  { %3039 = dma.done.wait [#allocation15], 22528  }
  0xbc   :  { %3040 = vsyncadd [#allocation15], 4294944768 }
  0xbd   :  { %3041 = dma.done.wait [#allocation18], 8192  }
  0xbe   :  { %3042 = vsyncadd [#allocation18], 4294959104  ;;  %v3061_v0 = vmov 0.0   ;;  %v192_v1 = vld [vmem:[#allocation2 + $0x8] sm:$0xff]  ;;  %v194_v2 = vld [vmem:[#allocation2 + $0x18] sm:$0xff]  ;;  %s3546_s22 = sld [smem:[#allocation27_spill]] }
  0xbf   :  { %277 = vmatprep.mubr.f32.mxu0 %v3061_v0  ;;  %v191_v3 = vld [vmem:[#allocation2] sm:$0xff]  ;;  %v2274_v4 = vpack.c.bf16 %v194_v2, %v192_v1  ;;  %v193_v5 = vld [vmem:[#allocation2 + $0x10] sm:$0xff]  ;;  %v196_v7 = vld [vmem:[#allocation2 + $0x28] sm:$0xff]  ;;  %vm209_vm0 = vcmask 195584   ;;  %s3547_s4 = sld [smem:[#allocation29_spill]]  ;;  %vm3063_vm1 = vmmov 0  }
  0xc0   :  { %v2276_v6 = vpack.c.bf16 %v193_v5, %v191_v3  ;;  %v287_v8 = vld [vmem:[#allocation5 + $0x8] sm:$0xff]  ;;  %v289_v9 = vld [vmem:[#allocation5 + $0x18] sm:$0xff]  ;;  %v286_v11 = vld [vmem:[#allocation5] sm:$0xff]  ;;  %s3065_s25 = smov [#allocation19]  }
  0xc1   :  { %2275 = vmatprep.subr.bf16.mxu0 %v2274_v4  ;;  %v2278_v10 = vpack.c.bf16 %v289_v9, %v287_v8  ;;  %v288_v12 = vld [vmem:[#allocation5 + $0x10] sm:$0xff]  ;;  %v291_v13 = vld [vmem:[#allocation5 + $0x28] sm:$0xff]  ;;  %v293_v15 = vld [vmem:[#allocation5 + $0x38] sm:$0xff]  ;;  %s1875_s30 = sshll.u32 %s3065_s25, 4  ;;  %s1876_s30 = int_to_ptr.vmem [resolvable:$true] %s1875_s30 }
  0xc2   :  { %2277 = vmatpush1.bf16.msra.mxu0 %v2276_v6  ;;  %v2280_v14 = vpack.c.bf16 %v288_v12, %v286_v11  ;;  %v290_v16 = vld [vmem:[#allocation5 + $0x20] sm:$0xff]  ;;  %v292_v17 = vld [vmem:[#allocation5 + $0x30] sm:$0xff]  ;;  %v2282_v19 = vpack.c.bf16 %v293_v15, %v291_v13  ;;  %v295_v20 = vld [vmem:[#allocation5 + $0x48] sm:$0xff]  ;;  %p3014_p11 = scmp.lt.s32.totalorder %s1876_s30, %s1876_s30 }
  0xc3   :  { %217 = vmatprep.subr.mxu0 %v196_v7  ;;  %v195_v18 = vld [vmem:[#allocation2 + $0x20] sm:$0xff]  ;;  %2279 = vmatprep.subr.bf16.mxu1 %v2278_v10  ;;  %v297_v21 = vld [vmem:[#allocation5 + $0x58] sm:$0xff]  ;;  %v2284_v23 = vpack.c.bf16 %v292_v17, %v290_v16  ;;  %v294_v25 = vld [vmem:[#allocation5 + $0x40] sm:$0xff] }
  0xc4   :  { %v190_v22 = vld [vmem:[%s3546_s22] sm:$0xff]  ;;  %2281 = vmatpush1.bf16.msra.mxu1 %v2280_v14  ;;  %v2286_v24 = vpack.c.bf16 %v297_v21, %v295_v20  ;;  %v299_v27 = vld [vmem:[#allocation5 + $0x68] sm:$0xff]  ;;  %v301_v28 = vld [vmem:[#allocation5 + $0x78] sm:$0xff] }
  0xc5   :  { %2283 = vmatprep.subr.bf16.mxu1 %v2282_v19  ;;  %v296_v26 = vld [vmem:[#allocation5 + $0x50] sm:$0xff]  ;;  %v2290_v30 = vpack.c.bf16 %v301_v28, %v299_v27  ;;  %v298_v31 = vld [vmem:[#allocation5 + $0x60] sm:$0xff]  ;;  %v303_v33 = vld [vmem:[#allocation5 + $0x88] sm:$0xff] }
  0xc6   :  { %218 = vmatpush1.msra.mxu0 %v195_v18  ;;  %v2288_v29 = vpack.c.bf16 %v296_v26, %v294_v25  ;;  %v300_v32 = vld [vmem:[#allocation5 + $0x70] sm:$0xff]  ;;  %v305_v34 = vld [vmem:[#allocation5 + $0x98] sm:$0xff]  ;;  %v302_v37 = vld [vmem:[#allocation5 + $0x80] sm:$0xff] }
  0xc7   :  { %1889 = vmatmul.mubr.msk.f32.vlgmr.msra.gmra.mrb[0].mxu0 %vm209_vm0, %v190_v22  ;;  %v2292_v35 = vpack.c.bf16 %v300_v32, %v298_v31  ;;  %v2294_v36 = vpack.c.bf16 %v305_v34, %v303_v33  ;;  %v304_v38 = vld [vmem:[#allocation5 + $0x90] sm:$0xff]  ;;  %v307_v39 = vld [vmem:[#allocation5 + $0xa8] sm:$0xff]  ;;  %v309_v40 = vld [vmem:[#allocation5 + $0xb8] sm:$0xff] }
  0xc8   :  { %2285 = vmatpush1.bf16.msra.mxu1 %v2284_v23  ;;  %v2296_v41 = vpack.c.bf16 %v304_v38, %v302_v37  ;;  %v2298_v42 = vpack.c.bf16 %v309_v40, %v307_v39  ;;  %v306_v43 = vld [vmem:[#allocation5 + $0xa0] sm:$0xff]  ;;  %v308_v44 = vld [vmem:[#allocation5 + $0xb0] sm:$0xff]  ;;  %v311_v45 = vld [vmem:[#allocation5 + $0xc8] sm:$0xff] }
  0xc9   :  { %2287 = vmatprep.subr.bf16.mxu1 %v2286_v24  ;;  %v313_v46 = vld [vmem:[#allocation5 + $0xd8] sm:$0xff]  ;;  %v2300_v47 = vpack.c.bf16 %v308_v44, %v306_v43  ;;  %v310_v49 = vld [vmem:[#allocation5 + $0xc0] sm:$0xff]  ;;  %v312_v50 = vld [vmem:[#allocation5 + $0xd0] sm:$0xff] }
  0xca   :  { %v2302_v48 = vpack.c.bf16 %v313_v46, %v311_v45  ;;  %v315_v51 = vld [vmem:[#allocation5 + $0xe8] sm:$0xff]  ;;  %v317_v52 = vld [vmem:[#allocation5 + $0xf8] sm:$0xff]  ;;  %v2304_v53 = vpack.c.bf16 %v312_v50, %v310_v49  ;;  %v314_v55 = vld [vmem:[#allocation5 + $0xe0] sm:$0xff] }
  0xcb   :  { %v2306_v54 = vpack.c.bf16 %v317_v52, %v315_v51  ;;  %v316_v56 = vld [vmem:[#allocation5 + $0xf0] sm:$0xff]  ;;  %v319_v57 = vld [vmem:[#allocation5 + $0x108] sm:$0xff]  ;;  %v321_v58 = vld [vmem:[#allocation5 + $0x118] sm:$0xff] }
  0xcc   :  { %2289 = vmatpush1.bf16.msra.mxu1 %v2288_v29  ;;  %v2308_v59 = vpack.c.bf16 %v316_v56, %v314_v55  ;;  %v2310_v60 = vpack.c.bf16 %v321_v58, %v319_v57  ;;  %v318_v61 = vld [vmem:[#allocation5 + $0x100] sm:$0xff]  ;;  %v320_v62 = vld [vmem:[#allocation5 + $0x110] sm:$0xff]  ;;  %v323_v63 = vld [vmem:[#allocation5 + $0x128] sm:$0xff] }
  0xcd   :  { %2291 = vmatprep.subr.bf16.mxu1 %v2290_v30  ;;  %v325_v1 = vld [vmem:[#allocation5 + $0x138] sm:$0xff]  ;;  %v2312_v2 = vpack.c.bf16 %v320_v62, %v318_v61  ;;  %v322_v4 = vld [vmem:[#allocation5 + $0x120] sm:$0xff]  ;;  %v324_v5 = vld [vmem:[#allocation5 + $0x130] sm:$0xff] }
  0xce   :  { %v2314_v3 = vpack.c.bf16 %v325_v1, %v323_v63  ;;  %v327_v6 = vld [vmem:[#allocation5 + $0x148] sm:$0xff]  ;;  %v329_v7 = vld [vmem:[#allocation5 + $0x158] sm:$0xff]  ;;  %v2316_v8 = vpack.c.bf16 %v324_v5, %v322_v4  ;;  %v326_v10 = vld [vmem:[#allocation5 + $0x140] sm:$0xff] }
  0xcf   :  { %v2318_v9 = vpack.c.bf16 %v329_v7, %v327_v6  ;;  %v328_v11 = vld [vmem:[#allocation5 + $0x150] sm:$0xff]  ;;  %v331_v12 = vld [vmem:[#allocation5 + $0x168] sm:$0xff]  ;;  %v333_v13 = vld [vmem:[#allocation5 + $0x178] sm:$0xff] }
  0xd0   :  { %2293 = vmatpush1.bf16.msra.mxu1 %v2292_v35  ;;  %v2320_v14 = vpack.c.bf16 %v328_v11, %v326_v10  ;;  %v2322_v15 = vpack.c.bf16 %v333_v13, %v331_v12  ;;  %v330_v16 = vld [vmem:[#allocation5 + $0x160] sm:$0xff]  ;;  %v332_v17 = vld [vmem:[#allocation5 + $0x170] sm:$0xff]  ;;  %v335_v18 = vld [vmem:[#allocation5 + $0x188] sm:$0xff] }
  0xd1   :  { %2295 = vmatprep.subr.bf16.mxu1 %v2294_v36  ;;  %v337_v19 = vld [vmem:[#allocation5 + $0x198] sm:$0xff]  ;;  %v2324_v20 = vpack.c.bf16 %v332_v17, %v330_v16  ;;  %v334_v22 = vld [vmem:[#allocation5 + $0x180] sm:$0xff]  ;;  %v336_v23 = vld [vmem:[#allocation5 + $0x190] sm:$0xff] }
  0xd2   :  { %v2326_v21 = vpack.c.bf16 %v337_v19, %v335_v18  ;;  %v339_v24 = vld [vmem:[#allocation5 + $0x1a8] sm:$0xff]  ;;  %v341_v25 = vld [vmem:[#allocation5 + $0x1b8] sm:$0xff]  ;;  %v2328_v26 = vpack.c.bf16 %v336_v23, %v334_v22  ;;  %v338_v28 = vld [vmem:[#allocation5 + $0x1a0] sm:$0xff] }
  0xd3   :  { %v2330_v27 = vpack.c.bf16 %v341_v25, %v339_v24  ;;  %v340_v29 = vld [vmem:[#allocation5 + $0x1b0] sm:$0xff]  ;;  %v343_v30 = vld [vmem:[#allocation5 + $0x1c8] sm:$0xff]  ;;  %v345_v31 = vld [vmem:[#allocation5 + $0x1d8] sm:$0xff] }
  0xd4   :  { %2297 = vmatpush1.bf16.msra.mxu1 %v2296_v41  ;;  %v2332_v32 = vpack.c.bf16 %v340_v29, %v338_v28  ;;  %v2334_v33 = vpack.c.bf16 %v345_v31, %v343_v30  ;;  %v342_v34 = vld [vmem:[#allocation5 + $0x1c0] sm:$0xff]  ;;  %v344_v35 = vld [vmem:[#allocation5 + $0x1d0] sm:$0xff]  ;;  %v347_v37 = vld [vmem:[#allocation5 + $0x1e8] sm:$0xff] }
  0xd5   :  { %2299 = vmatprep.subr.bf16.mxu1 %v2298_v42  ;;  %v2336_v36 = vpack.c.bf16 %v344_v35, %v342_v34  ;;  %v349_v38 = vld [vmem:[#allocation5 + $0x1f8] sm:$0xff]  ;;  %v346_v40 = vld [vmem:[#allocation5 + $0x1e0] sm:$0xff]  ;;  %v348_v41 = vld [vmem:[#allocation5 + $0x1f0] sm:$0xff] }
  0xd6   :  { %v2338_v39 = vpack.c.bf16 %v349_v38, %v347_v37  ;;  %v2340_v42 = vpack.c.bf16 %v348_v41, %v346_v40  ;;  %v436_v43 = vld [vmem:[#allocation8 + $0x8] sm:$0xff]  ;;  %v438_v44 = vld [vmem:[#allocation8 + $0x18] sm:$0xff]  ;;  %v435_v45 = vld [vmem:[#allocation8] sm:$0xff] }
  0xd7   :  { %v2342_v46 = vpack.c.bf16 %v438_v44, %v436_v43  ;;  %v442_v49 = vld [vmem:[#allocation8 + $0x38] sm:$0xff]  ;;  %v439_v52 = vld [vmem:[#allocation8 + $0x20] sm:$0xff]  ;;  %v473_v38 = vld [vmem:[#allocation8 + $0x130] sm:$0xff] }
  0xd8   :  { %2301 = vmatpush1.bf16.msra.mxu1 %v2300_v47  ;;  %v437_v47 = vld [vmem:[#allocation8 + $0x10] sm:$0xff]  ;;  %v446_v55 = vld [vmem:[#allocation8 + $0x58] sm:$0xff]  ;;  %v443_v58 = vld [vmem:[#allocation8 + $0x40] sm:$0xff] }
  0xd9   :  { %2303 = vmatprep.subr.bf16.mxu1 %v2302_v48  ;;  %v440_v48 = vld [vmem:[#allocation8 + $0x28] sm:$0xff]  ;;  %v2344_v50 = vpack.c.bf16 %v437_v47, %v435_v45  ;;  %2343 = vmatprep.subr.bf16.mxu0 %v2342_v46  ;;  %v450_v61 = vld [vmem:[#allocation8 + $0x78] sm:$0xff]  ;;  %v447_v1 = vld [vmem:[#allocation8 + $0x60] sm:$0xff] }
  0xda   :  { %v2346_v51 = vpack.c.bf16 %v442_v49, %v440_v48  ;;  %v454_v4 = vld [vmem:[#allocation8 + $0x98] sm:$0xff]  ;;  %v451_v7 = vld [vmem:[#allocation8 + $0x80] sm:$0xff]  ;;  %v477_v44 = vld [vmem:[#allocation8 + $0x150] sm:$0xff] }
  0xdb   :  { %2345 = vmatpush1.bf16.msra.mxu0 %v2344_v50  ;;  %v458_v10 = vld [vmem:[#allocation8 + $0xb8] sm:$0xff]  ;;  %v455_v13 = vld [vmem:[#allocation8 + $0xa0] sm:$0xff]  ;;  %v480_v45 = vld [vmem:[#allocation8 + $0x168] sm:$0xff] }
  0xdc   :  { %2305 = vmatpush1.bf16.msra.mxu1 %v2304_v53  ;;  %v441_v53 = vld [vmem:[#allocation8 + $0x30] sm:$0xff]  ;;  %2347 = vmatprep.subr.bf16.mxu0 %v2346_v51  ;;  %v462_v16 = vld [vmem:[#allocation8 + $0xd8] sm:$0xff]  ;;  %v459_v19 = vld [vmem:[#allocation8 + $0xc0] sm:$0xff] }
  0xdd   :  { %2307 = vmatprep.subr.bf16.mxu1 %v2306_v54  ;;  %v444_v54 = vld [vmem:[#allocation8 + $0x48] sm:$0xff]  ;;  %v2348_v56 = vpack.c.bf16 %v441_v53, %v439_v52  ;;  %v466_v22 = vld [vmem:[#allocation8 + $0xf8] sm:$0xff]  ;;  %v463_v25 = vld [vmem:[#allocation8 + $0xe0] sm:$0xff] }
  0xde   :  { %v2350_v57 = vpack.c.bf16 %v446_v55, %v444_v54  ;;  %v470_v28 = vld [vmem:[#allocation8 + $0x118] sm:$0xff]  ;;  %v467_v31 = vld [vmem:[#allocation8 + $0x100] sm:$0xff]  ;;  %v481_v50 = vld [vmem:[#allocation8 + $0x170] sm:$0xff] }
  0xdf   :  { %2349 = vmatpush1.bf16.msra.mxu0 %v2348_v56  ;;  %v474_v34 = vld [vmem:[#allocation8 + $0x138] sm:$0xff]  ;;  %v471_v37 = vld [vmem:[#allocation8 + $0x120] sm:$0xff]  ;;  %v484_v51 = vld [vmem:[#allocation8 + $0x188] sm:$0xff] }
  0xe0   :  { %2309 = vmatpush1.bf16.msra.mxu1 %v2308_v59  ;;  %v445_v59 = vld [vmem:[#allocation8 + $0x50] sm:$0xff]  ;;  %2351 = vmatprep.subr.bf16.mxu0 %v2350_v57  ;;  %v478_v40 = vld [vmem:[#allocation8 + $0x158] sm:$0xff]  ;;  %v2380_v41 = vpack.c.bf16 %v473_v38, %v471_v37  ;;  %v475_v43 = vld [vmem:[#allocation8 + $0x140] sm:$0xff] }
  0xe1   :  { %2311 = vmatprep.subr.bf16.mxu1 %v2310_v60  ;;  %v448_v60 = vld [vmem:[#allocation8 + $0x68] sm:$0xff]  ;;  %v2352_v62 = vpack.c.bf16 %v445_v59, %v443_v58  ;;  %v482_v46 = vld [vmem:[#allocation8 + $0x178] sm:$0xff]  ;;  %v2384_v47 = vpack.c.bf16 %v477_v44, %v475_v43  ;;  %v479_v49 = vld [vmem:[#allocation8 + $0x160] sm:$0xff] }
  0xe2   :  { %v2354_v63 = vpack.c.bf16 %v450_v61, %v448_v60  ;;  %v2386_v48 = vpack.c.bf16 %v482_v46, %v480_v45  ;;  %v486_v52 = vld [vmem:[#allocation8 + $0x198] sm:$0xff]  ;;  %v2388_v53 = vpack.c.bf16 %v481_v50, %v479_v49  ;;  %v483_v55 = vld [vmem:[#allocation8 + $0x180] sm:$0xff]  ;;  %v485_v56 = vld [vmem:[#allocation8 + $0x190] sm:$0xff] }
  0xe3   :  { %2353 = vmatpush1.bf16.msra.mxu0 %v2352_v62  ;;  %v2390_v54 = vpack.c.bf16 %v486_v52, %v484_v51  ;;  %v488_v57 = vld [vmem:[#allocation8 + $0x1a8] sm:$0xff]  ;;  %v490_v58 = vld [vmem:[#allocation8 + $0x1b8] sm:$0xff]  ;;  %v2392_v59 = vpack.c.bf16 %v485_v56, %v483_v55  ;;  %v487_v61 = vld [vmem:[#allocation8 + $0x1a0] sm:$0xff] }
  0xe4   :  { %2313 = vmatpush1.bf16.msra.mxu1 %v2312_v2  ;;  %v449_v2 = vld [vmem:[#allocation8 + $0x70] sm:$0xff]  ;;  %2355 = vmatprep.subr.bf16.mxu0 %v2354_v63  ;;  %v2394_v60 = vpack.c.bf16 %v490_v58, %v488_v57  ;;  %v492_v63 = vld [vmem:[#allocation8 + $0x1c8] sm:$0xff]  ;;  %v595_v38 = vld [vmem:[#allocation11 + $0x58] sm:$0xff] }
  0xe5   :  { %2315 = vmatprep.subr.bf16.mxu1 %v2314_v3  ;;  %v452_v3 = vld [vmem:[#allocation8 + $0x88] sm:$0xff]  ;;  %v2356_v5 = vpack.c.bf16 %v449_v2, %v447_v1  ;;  %v489_v62 = vld [vmem:[#allocation8 + $0x1b0] sm:$0xff]  ;;  %v494_v1 = vld [vmem:[#allocation8 + $0x1d8] sm:$0xff] }
  0xe6   :  { %v2358_v6 = vpack.c.bf16 %v454_v4, %v452_v3  ;;  %v2396_v2 = vpack.c.bf16 %v489_v62, %v487_v61  ;;  %v2398_v3 = vpack.c.bf16 %v494_v1, %v492_v63  ;;  %v199_v4 = vlaneseq  ;;  %v593_v37 = vld [vmem:[#allocation11 + $0x48] sm:$0xff]  ;;  %v599_v44 = vld [vmem:[#allocation11 + $0x78] sm:$0xff] }
  0xe7   :  { %2357 = vmatpush1.bf16.msra.mxu0 %v2356_v5  ;;  %v597_v43 = vld [vmem:[#allocation11 + $0x68] sm:$0xff]  ;;  %v603_v50 = vld [vmem:[#allocation11 + $0x98] sm:$0xff] }
  0xe8   :  { %2317 = vmatpush1.bf16.msra.mxu1 %v2316_v8  ;;  %v453_v8 = vld [vmem:[#allocation8 + $0x90] sm:$0xff]  ;;  %2359 = vmatprep.subr.bf16.mxu0 %v2358_v6  ;;  %v3312_v5 = vshrl.u32 %v199_v4, 7  ;;  %v2418_v46 = vpack.c.bf16 %v599_v44, %v597_v43  ;;  %v607_v56 = vld [vmem:[#allocation11 + $0xb8] sm:$0xff] }
  0xe9   :  { %2319 = vmatprep.subr.bf16.mxu1 %v2318_v9  ;;  %v456_v9 = vld [vmem:[#allocation8 + $0xa8] sm:$0xff]  ;;  %v2360_v11 = vpack.c.bf16 %v453_v8, %v451_v7  ;;  %v611_v62 = vld [vmem:[#allocation11 + $0xd8] sm:$0xff]  ;;  %v634_v43 = vld [vmem:[#allocation11 + $0x190] sm:$0xff] }
  0xea   :  { %v2362_v12 = vpack.c.bf16 %v458_v10, %v456_v9  ;;  %v3315_v6 = vsub.s32 0, %v3312_v5  ;;  %v197_v7 = vld [vmem:[%s3547_s4] sm:$0x3]  ;;  %v3321_v8 = vsub.s32 1, %v3312_v5 }
  0xeb   :  { %2361 = vmatpush1.bf16.msra.mxu0 %v2360_v11  ;;  %v601_v49 = vld [vmem:[#allocation11 + $0x88] sm:$0xff] }
  0xec   :  { %2321 = vmatpush1.bf16.msra.mxu1 %v2320_v14  ;;  %v457_v14 = vld [vmem:[#allocation8 + $0xb0] sm:$0xff]  ;;  %2363 = vmatprep.subr.bf16.mxu0 %v2362_v12  ;;  %v202_v9 = vrot.slane %v197_v7, %v3315_v6  ;;  %v206_v10 = vrot.slane %v197_v7, %v3321_v8  ;;  %v2422_v52 = vpack.c.bf16 %v603_v50, %v601_v49 }
  0xed   :  { %2323 = vmatprep.subr.bf16.mxu1 %v2322_v15  ;;  %v460_v15 = vld [vmem:[#allocation8 + $0xc8] sm:$0xff]  ;;  %v2364_v17 = vpack.c.bf16 %v457_v14, %v455_v13  ;;  %v638_v49 = vld [vmem:[#allocation11 + $0x1b0] sm:$0xff] }
  0xee   :  { %v2366_v18 = vpack.c.bf16 %v462_v16, %v460_v15  ;;  %v605_v55 = vld [vmem:[#allocation11 + $0xa8] sm:$0xff] }
  0xef   :  { %2365 = vmatpush1.bf16.msra.mxu0 %v2364_v17  ;;  %v491_v17 = vld [vmem:[#allocation8 + $0x1c0] sm:$0xff]  ;;  %v2426_v58 = vpack.c.bf16 %v607_v56, %v605_v55  ;;  %v609_v61 = vld [vmem:[#allocation11 + $0xc8] sm:$0xff] }
  0xf0   :  { %2325 = vmatpush1.bf16.msra.mxu1 %v2324_v20  ;;  %v461_v20 = vld [vmem:[#allocation8 + $0xd0] sm:$0xff]  ;;  %2367 = vmatprep.subr.bf16.mxu0 %v2366_v18  ;;  %v2430_v1 = vpack.c.bf16 %v611_v62, %v609_v61 }
  0xf1   :  { %2327 = vmatprep.subr.bf16.mxu1 %v2326_v21  ;;  %v464_v21 = vld [vmem:[#allocation8 + $0xe8] sm:$0xff]  ;;  %v2368_v23 = vpack.c.bf16 %v461_v20, %v459_v19  ;;  %v493_v18 = vld [vmem:[#allocation8 + $0x1d0] sm:$0xff] }
  0xf2   :  { %v2370_v24 = vpack.c.bf16 %v466_v22, %v464_v21  ;;  %v2400_v19 = vpack.c.bf16 %v493_v18, %v491_v17  ;;  %v496_v20 = vld [vmem:[#allocation8 + $0x1e8] sm:$0xff]  ;;  %v498_v21 = vld [vmem:[#allocation8 + $0x1f8] sm:$0xff] }
  0xf3   :  { %2369 = vmatpush1.bf16.msra.mxu0 %v2368_v23  ;;  %v2402_v22 = vpack.c.bf16 %v498_v21, %v496_v20  ;;  %v495_v23 = vld [vmem:[#allocation8 + $0x1e0] sm:$0xff]  ;;  %v613_v7 = vld [vmem:[#allocation11 + $0xe8] sm:$0xff] }
  0xf4   :  { %2329 = vmatpush1.bf16.msra.mxu1 %v2328_v26  ;;  %v465_v26 = vld [vmem:[#allocation8 + $0xf0] sm:$0xff]  ;;  %2371 = vmatprep.subr.bf16.mxu0 %v2370_v24  ;;  %v616_v18 = vld [vmem:[#allocation11 + $0x100] sm:$0xff]  ;;  %v623_v21 = vld [vmem:[#allocation11 + $0x138] sm:$0xff] }
  0xf5   :  { %2331 = vmatprep.subr.bf16.mxu1 %v2330_v27  ;;  %v468_v27 = vld [vmem:[#allocation8 + $0x108] sm:$0xff]  ;;  %v2372_v29 = vpack.c.bf16 %v465_v26, %v463_v25  ;;  %v497_v24 = vld [vmem:[#allocation8 + $0x1f0] sm:$0xff] }
  0xf6   :  { %v2374_v30 = vpack.c.bf16 %v470_v28, %v468_v27  ;;  %v2404_v25 = vpack.c.bf16 %v497_v24, %v495_v23  ;;  %v585_v26 = vld [vmem:[#allocation11 + $0x8] sm:$0xff]  ;;  %v587_v27 = vld [vmem:[#allocation11 + $0x18] sm:$0xff]  ;;  %v584_v28 = vld [vmem:[#allocation11] sm:$0xff] }
  0xf7   :  { %2373 = vmatpush1.bf16.msra.mxu0 %v2372_v29  ;;  %v2406_v29 = vpack.c.bf16 %v587_v27, %v585_v26  ;;  %v621_v20 = vld [vmem:[#allocation11 + $0x128] sm:$0xff]  ;;  %v620_v24 = vld [vmem:[#allocation11 + $0x120] sm:$0xff]  ;;  %v627_v27 = vld [vmem:[#allocation11 + $0x158] sm:$0xff] }
  0xf8   :  { %2333 = vmatpush1.bf16.msra.mxu1 %v2332_v32  ;;  %v469_v32 = vld [vmem:[#allocation8 + $0x110] sm:$0xff]  ;;  %2375 = vmatprep.subr.bf16.mxu0 %v2374_v30  ;;  %v2442_v23 = vpack.c.bf16 %v623_v21, %v621_v20 }
  0xf9   :  { %2335 = vmatprep.subr.bf16.mxu1 %v2334_v33  ;;  %v472_v33 = vld [vmem:[#allocation8 + $0x128] sm:$0xff]  ;;  %v2376_v35 = vpack.c.bf16 %v469_v32, %v467_v31  ;;  %v586_v30 = vld [vmem:[#allocation11 + $0x10] sm:$0xff]  ;;  %v591_v32 = vld [vmem:[#allocation11 + $0x38] sm:$0xff] }
  0xfa   :  { %v589_v31 = vld [vmem:[#allocation11 + $0x28] sm:$0xff] }
  0xfb   :  { %2377 = vmatpush1.bf16.msra.mxu0 %v2376_v35  ;;  %v588_v35 = vld [vmem:[#allocation11 + $0x20] sm:$0xff]  ;;  %v625_v26 = vld [vmem:[#allocation11 + $0x148] sm:$0xff] }
  0xfc   :  { %2337 = vmatpush1.bf16.msra.mxu1 %v2336_v36  ;;  %v2378_v36 = vpack.c.bf16 %v474_v34, %v472_v33  ;;  %v2408_v33 = vpack.c.bf16 %v586_v30, %v584_v28  ;;  %v2410_v34 = vpack.c.bf16 %v591_v32, %v589_v31  ;;  %v624_v30 = vld [vmem:[#allocation11 + $0x140] sm:$0xff]  ;;  %v626_v31 = vld [vmem:[#allocation11 + $0x150] sm:$0xff]  ;;  %v629_v32 = vld [vmem:[#allocation11 + $0x168] sm:$0xff] }
  0xfd   :  { %2339 = vmatprep.subr.bf16.mxu1 %v2338_v39  ;;  %v476_v39 = vld [vmem:[#allocation8 + $0x148] sm:$0xff] }
  0xfe   :  { %2379 = vmatprep.subr.bf16.mxu0 %v2378_v36  ;;  %v590_v36 = vld [vmem:[#allocation11 + $0x30] sm:$0xff]  ;;  %v637_v44 = vld [vmem:[#allocation11 + $0x1a8] sm:$0xff] }
  0xff   :  { %2381 = vmatpush1.bf16.msra.mxu0 %v2380_v41  ;;  %v592_v41 = vld [vmem:[#allocation11 + $0x40] sm:$0xff]  ;;  %v641_v50 = vld [vmem:[#allocation11 + $0x1c8] sm:$0xff] }
 0x100   :  { %2341 = vmatpush1.bf16.msra.mxu1 %v2340_v42  ;;  %v2382_v42 = vpack.c.bf16 %v478_v40, %v476_v39  ;;  %v2412_v39 = vpack.c.bf16 %v590_v36, %v588_v35  ;;  %v2414_v40 = vpack.c.bf16 %v595_v38, %v593_v37  ;;  %v628_v36 = vld [vmem:[#allocation11 + $0x160] sm:$0xff]  ;;  %v630_v37 = vld [vmem:[#allocation11 + $0x170] sm:$0xff]  ;;  %v633_v38 = vld [vmem:[#allocation11 + $0x188] sm:$0xff] }
 0x101   :  { %2407 = vmatprep.subr.bf16.mxu1 %v2406_v29  ;;  %v2446_v29 = vpack.c.bf16 %v627_v27, %v625_v26  ;;  %v743_v26 = vld [vmem:[#allocation14 + $0x60] sm:$0xff] }
 0x102   :  { %2383 = vmatprep.subr.bf16.mxu0 %v2382_v42  ;;  %v594_v42 = vld [vmem:[#allocation11 + $0x50] sm:$0xff] }
 0x103   :  { %2385 = vmatpush1.bf16.msra.mxu0 %v2384_v47  ;;  %v2416_v45 = vpack.c.bf16 %v594_v42, %v592_v41  ;;  %v596_v47 = vld [vmem:[#allocation11 + $0x60] sm:$0xff] }
 0x104   :  { %2387 = vmatprep.subr.bf16.mxu0 %v2386_v48  ;;  %v598_v48 = vld [vmem:[#allocation11 + $0x70] sm:$0xff]  ;;  %v632_v42 = vld [vmem:[#allocation11 + $0x180] sm:$0xff] }
 0x105   :  { %v2420_v51 = vpack.c.bf16 %v598_v48, %v596_v47  ;;  %v636_v48 = vld [vmem:[#allocation11 + $0x1a0] sm:$0xff] }
 0x107   :  { %2389 = vmatpush1.bf16.msra.mxu0 %v2388_v53  ;;  %v600_v53 = vld [vmem:[#allocation11 + $0x80] sm:$0xff] }
 0x108   :  { %2391 = vmatprep.subr.bf16.mxu0 %v2390_v54  ;;  %v602_v54 = vld [vmem:[#allocation11 + $0x90] sm:$0xff] }
 0x109   :  { %v2424_v57 = vpack.c.bf16 %v602_v54, %v600_v53  ;;  %v350_v54 = vld [vmem:[#allocation7] sm:$0x3] }
 0x10a   :  { %v355_v55 = vrot.slane %v350_v54, %v3315_v6  ;;  %v359_v56 = vrot.slane %v350_v54, %v3321_v8 }
 0x10b   :  { %2393 = vmatpush1.bf16.msra.mxu0 %v2392_v59  ;;  %v604_v59 = vld [vmem:[#allocation11 + $0xa0] sm:$0xff] }
 0x10c   :  { %2395 = vmatprep.subr.bf16.mxu0 %v2394_v60  ;;  %v606_v60 = vld [vmem:[#allocation11 + $0xb0] sm:$0xff] }
 0x10d   :  { %v2428_v63 = vpack.c.bf16 %v606_v60, %v604_v59 }
 0x10f   :  { %2397 = vmatpush1.bf16.msra.mxu0 %v2396_v2  ;;  %v608_v2 = vld [vmem:[#allocation11 + $0xc0] sm:$0xff] }
 0x110   :  { %2399 = vmatprep.subr.bf16.mxu0 %v2398_v3  ;;  %v610_v3 = vld [vmem:[#allocation11 + $0xd0] sm:$0xff] }
 0x113   :  { %2401 = vmatpush1.bf16.msra.mxu0 %v2400_v19  ;;  %v618_v19 = vld [vmem:[#allocation11 + $0x110] sm:$0xff] }
 0x114   :  { %2403 = vmatprep.subr.bf16.mxu0 %v2402_v22  ;;  %v2440_v22 = vpack.c.bf16 %v618_v19, %v616_v18  ;;  %v731_v18 = vld [vmem:[#allocation14] sm:$0xff] }
 0x115   :  { %v735_v19 = vld [vmem:[#allocation14 + $0x20] sm:$0xff] }
 0x116   :  { %v2472_v21 = vpack.c.bf16 %v735_v19, %v731_v18  ;;  %v816_v18 = vld [vmem:[#allocation14 + $0x2a8] sm:$0xff] }
 0x117   :  { %2405 = vmatpush1.bf16.msra.mxu0 %v2404_v25  ;;  %v622_v25 = vld [vmem:[#allocation11 + $0x130] sm:$0xff] }
 0x118   :  { %v2444_v28 = vpack.c.bf16 %v622_v25, %v620_v24  ;;  %v739_v25 = vld [vmem:[#allocation14 + $0x40] sm:$0xff] }
 0x119   :  { %v2476_v27 = vpack.c.bf16 %v743_v26, %v739_v25  ;;  %v819_v26 = vld [vmem:[#allocation14 + $0x2c0] sm:$0xff] }
 0x19a   :  { %v279_v11 = vpop.f32.mrb[0].mxu0 }
 0x19b   :  { %v280_v12 = vadd.f32 %v279_v11, %v202_v9  ;;  %v281_v13 = vpop.f32.mrb[1].mxu0  ;;  %v615_v9 = vld [vmem:[#allocation11 + $0xf8] sm:$0xff] }
 0x19c   :  { %v282_v14 = vadd.f32 %v281_v13, %v206_v10  ;;  %v2432_v10 = vpack.c.bf16 %v610_v3, %v608_v2  ;;  %v2434_v11 = vpack.c.bf16 %v615_v9, %v613_v7  ;;  %v614_v13 = vld [vmem:[#allocation11 + $0xf0] sm:$0xff]  ;;  %v645_v3 = vld [vmem:[#allocation11 + $0x1e8] sm:$0xff]  ;;  %v647_v7 = vld [vmem:[#allocation11 + $0x1f8] sm:$0xff] }
 0x19d   :  { %v284_v16 = vmax.f32 %v280_v12, 0.0  ;;  %v612_v12 = vld [vmem:[#allocation11 + $0xe0] sm:$0xff]  ;;  %v2466_v9 = vpack.c.bf16 %v647_v7, %v645_v3 }
 0x19e   :  { %v285_v15 = vmax.f32 %v282_v14, 0.0  ;;  %v617_v14 = vld [vmem:[#allocation11 + $0x108] sm:$0xff] }
 0x19f   :  { %v795_v7 = vld [vmem:[#allocation14 + $0x200] sm:$0xff] }
 0x1a0   :  { %426 = vmatprep.mubr.f32.mxu1 %v285_v15  ;;  %v619_v15 = vld [vmem:[#allocation11 + $0x118] sm:$0xff] }
 0x1a1   :  { %427 = vmatmul.mubr.f32.vlgmr.msra.gmra.mrb[0].mxu1 %v284_v16  ;;  %v2436_v16 = vpack.c.bf16 %v614_v13, %v612_v12  ;;  %v2438_v17 = vpack.c.bf16 %v619_v15, %v617_v14  ;;  %v732_v13 = vld [vmem:[#allocation14 + $0x8] sm:$0xff]  ;;  %v734_v15 = vld [vmem:[#allocation14 + $0x18] sm:$0xff] }
 0x1a2   :  { %2409 = vmatpush1.bf16.msra.mxu1 %v2408_v33  ;;  %v631_v33 = vld [vmem:[#allocation11 + $0x178] sm:$0xff]  ;;  %v736_v14 = vld [vmem:[#allocation14 + $0x28] sm:$0xff] }
 0x1a3   :  { %2411 = vmatprep.subr.bf16.mxu1 %v2410_v34  ;;  %v2448_v34 = vpack.c.bf16 %v626_v31, %v624_v30  ;;  %v2450_v35 = vpack.c.bf16 %v631_v33, %v629_v32  ;;  %v747_v31 = vld [vmem:[#allocation14 + $0x80] sm:$0xff] }
 0x1a4   :  { %v751_v32 = vld [vmem:[#allocation14 + $0xa0] sm:$0xff] }
 0x1a5   :  { %v2480_v33 = vpack.c.bf16 %v751_v32, %v747_v31  ;;  %v827_v32 = vld [vmem:[#allocation14 + $0x300] sm:$0xff] }
 0x1a6   :  { %2413 = vmatpush1.bf16.msra.mxu1 %v2412_v39  ;;  %v635_v39 = vld [vmem:[#allocation11 + $0x198] sm:$0xff] }
 0x1a7   :  { %2415 = vmatprep.subr.bf16.mxu1 %v2414_v40  ;;  %v2452_v40 = vpack.c.bf16 %v630_v37, %v628_v36  ;;  %v2454_v41 = vpack.c.bf16 %v635_v39, %v633_v38  ;;  %v755_v37 = vld [vmem:[#allocation14 + $0xc0] sm:$0xff] }
 0x1a8   :  { %v759_v38 = vld [vmem:[#allocation14 + $0xe0] sm:$0xff] }
 0x1a9   :  { %v2484_v39 = vpack.c.bf16 %v759_v38, %v755_v37  ;;  %v835_v38 = vld [vmem:[#allocation14 + $0x340] sm:$0xff] }
 0x1aa   :  { %2417 = vmatpush1.bf16.msra.mxu1 %v2416_v45  ;;  %v639_v45 = vld [vmem:[#allocation11 + $0x1b8] sm:$0xff] }
 0x1ab   :  { %2419 = vmatprep.subr.bf16.mxu1 %v2418_v46  ;;  %v2456_v46 = vpack.c.bf16 %v634_v43, %v632_v42  ;;  %v2458_v47 = vpack.c.bf16 %v639_v45, %v637_v44  ;;  %v763_v43 = vld [vmem:[#allocation14 + $0x100] sm:$0xff] }
 0x1ac   :  { %v767_v44 = vld [vmem:[#allocation14 + $0x120] sm:$0xff] }
 0x1ad   :  { %v2488_v45 = vpack.c.bf16 %v767_v44, %v763_v43  ;;  %v843_v44 = vld [vmem:[#allocation14 + $0x380] sm:$0xff] }
 0x1ae   :  { %2421 = vmatpush1.bf16.msra.mxu1 %v2420_v51  ;;  %v643_v51 = vld [vmem:[#allocation11 + $0x1d8] sm:$0xff] }
 0x1af   :  { %2423 = vmatprep.subr.bf16.mxu1 %v2422_v52  ;;  %v2460_v52 = vpack.c.bf16 %v638_v49, %v636_v48  ;;  %v2462_v53 = vpack.c.bf16 %v643_v51, %v641_v50  ;;  %v771_v49 = vld [vmem:[#allocation14 + $0x140] sm:$0xff] }
 0x1b0   :  { %v775_v50 = vld [vmem:[#allocation14 + $0x160] sm:$0xff] }
 0x1b1   :  { %v2492_v51 = vpack.c.bf16 %v775_v50, %v771_v49 }
 0x1b2   :  { %2425 = vmatpush1.bf16.msra.mxu1 %v2424_v57 }
 0x1b3   :  { %2427 = vmatprep.subr.bf16.mxu1 %v2426_v58 }
 0x1b6   :  { %2429 = vmatpush1.bf16.msra.mxu1 %v2428_v63  ;;  %v640_v63 = vld [vmem:[#allocation11 + $0x1c0] sm:$0xff] }
 0x1b7   :  { %2431 = vmatprep.subr.bf16.mxu1 %v2430_v1  ;;  %v642_v1 = vld [vmem:[#allocation11 + $0x1d0] sm:$0xff] }
 0x1b8   :  { %v2464_v2 = vpack.c.bf16 %v642_v1, %v640_v63  ;;  %v796_v1 = vld [vmem:[#allocation14 + $0x208] sm:$0xff] }
 0x1ba   :  { %2433 = vmatpush1.bf16.msra.mxu1 %v2432_v10  ;;  %v644_v10 = vld [vmem:[#allocation11 + $0x1e0] sm:$0xff] }
 0x1bb   :  { %2435 = vmatprep.subr.bf16.mxu1 %v2434_v11  ;;  %v646_v11 = vld [vmem:[#allocation11 + $0x1f0] sm:$0xff] }
 0x1bc   :  { %v2468_v12 = vpack.c.bf16 %v646_v11, %v644_v10  ;;  %v804_v11 = vld [vmem:[#allocation14 + $0x248] sm:$0xff] }
 0x1be   :  { %2437 = vmatpush1.bf16.msra.mxu1 %v2436_v16  ;;  %v2470_v16 = vpack.c.bf16 %v736_v14, %v732_v13  ;;  %v803_v14 = vld [vmem:[#allocation14 + $0x240] sm:$0xff] }
 0x1bf   :  { %2439 = vmatprep.subr.bf16.mxu1 %v2438_v17  ;;  %v738_v17 = vld [vmem:[#allocation14 + $0x38] sm:$0xff] }
 0x1c0   :  { %v2534_v20 = vpack.c.bf16 %v738_v17, %v734_v15  ;;  %2471 = vmatprep.subr.bf16.mxu0 %v2470_v16  ;;  %v807_v15 = vld [vmem:[#allocation14 + $0x260] sm:$0xff]  ;;  %v812_v17 = vld [vmem:[#allocation14 + $0x288] sm:$0xff] }
 0x1c1   :  { %v2508_v16 = vpack.c.bf16 %v807_v15, %v803_v14  ;;  %v2510_v19 = vpack.c.bf16 %v816_v18, %v812_v17  ;;  %v757_v15 = vld [vmem:[#allocation14 + $0xd0] sm:$0xff]  ;;  %v766_v17 = vld [vmem:[#allocation14 + $0x118] sm:$0xff] }
 0x1c2   :  { %2441 = vmatpush1.bf16.msra.mxu1 %v2440_v22  ;;  %v740_v22 = vld [vmem:[#allocation14 + $0x48] sm:$0xff]  ;;  %v770_v18 = vld [vmem:[#allocation14 + $0x138] sm:$0xff] }
 0x1c3   :  { %2443 = vmatprep.subr.bf16.mxu1 %v2442_v23  ;;  %v744_v23 = vld [vmem:[#allocation14 + $0x68] sm:$0xff] }
 0x1c4   :  { %v2474_v24 = vpack.c.bf16 %v744_v23, %v740_v22  ;;  %v820_v23 = vld [vmem:[#allocation14 + $0x2c8] sm:$0xff] }
 0x1c6   :  { %2445 = vmatpush1.bf16.msra.mxu1 %v2444_v28  ;;  %v748_v28 = vld [vmem:[#allocation14 + $0x88] sm:$0xff] }
 0x1c7   :  { %2447 = vmatprep.subr.bf16.mxu1 %v2446_v29  ;;  %v752_v29 = vld [vmem:[#allocation14 + $0xa8] sm:$0xff] }
 0x1c8   :  { %v2478_v30 = vpack.c.bf16 %v752_v29, %v748_v28  ;;  %v828_v29 = vld [vmem:[#allocation14 + $0x308] sm:$0xff] }
 0x1ca   :  { %2449 = vmatpush1.bf16.msra.mxu1 %v2448_v34  ;;  %v756_v34 = vld [vmem:[#allocation14 + $0xc8] sm:$0xff] }
 0x1cb   :  { %2451 = vmatprep.subr.bf16.mxu1 %v2450_v35  ;;  %v760_v35 = vld [vmem:[#allocation14 + $0xe8] sm:$0xff] }
 0x1cc   :  { %v2482_v36 = vpack.c.bf16 %v760_v35, %v756_v34  ;;  %v836_v35 = vld [vmem:[#allocation14 + $0x348] sm:$0xff] }
 0x1ce   :  { %2453 = vmatpush1.bf16.msra.mxu1 %v2452_v40  ;;  %v764_v40 = vld [vmem:[#allocation14 + $0x108] sm:$0xff] }
 0x1cf   :  { %2455 = vmatprep.subr.bf16.mxu1 %v2454_v41  ;;  %v768_v41 = vld [vmem:[#allocation14 + $0x128] sm:$0xff] }
 0x1d0   :  { %v2486_v42 = vpack.c.bf16 %v768_v41, %v764_v40  ;;  %v844_v41 = vld [vmem:[#allocation14 + $0x388] sm:$0xff] }
 0x1d2   :  { %2457 = vmatpush1.bf16.msra.mxu1 %v2456_v46  ;;  %v772_v46 = vld [vmem:[#allocation14 + $0x148] sm:$0xff] }
 0x1d3   :  { %2459 = vmatprep.subr.bf16.mxu1 %v2458_v47  ;;  %v776_v47 = vld [vmem:[#allocation14 + $0x168] sm:$0xff] }
 0x1d4   :  { %v2490_v48 = vpack.c.bf16 %v776_v47, %v772_v46  ;;  %v499_v47 = vld [vmem:[#allocation10] sm:$0x3] }
 0x1d5   :  { %v508_v49 = vrot.slane %v499_v47, %v3321_v8 }
 0x1d6   :  { %2461 = vmatpush1.bf16.msra.mxu1 %v2460_v52  ;;  %v780_v52 = vld [vmem:[#allocation14 + $0x188] sm:$0xff] }
 0x1d7   :  { %2463 = vmatprep.subr.bf16.mxu1 %v2462_v53  ;;  %v784_v53 = vld [vmem:[#allocation14 + $0x1a8] sm:$0xff] }
 0x1d8   :  { %v2494_v54 = vpack.c.bf16 %v784_v53, %v780_v52  ;;  %v733_v53 = vld [vmem:[#allocation14 + $0x10] sm:$0xff] }
 0x1da   :  { %2465 = vmatpush1.bf16.msra.mxu1 %v2464_v2  ;;  %v800_v2 = vld [vmem:[#allocation14 + $0x228] sm:$0xff] }
 0x1db   :  { %2467 = vmatprep.subr.bf16.mxu1 %v2466_v9  ;;  %v2502_v3 = vpack.c.bf16 %v800_v2, %v796_v1  ;;  %v799_v9 = vld [vmem:[#allocation14 + $0x220] sm:$0xff]  ;;  %v750_v1 = vld [vmem:[#allocation14 + $0x98] sm:$0xff] }
 0x1dc   :  { %v2504_v10 = vpack.c.bf16 %v799_v9, %v795_v7  ;;  %v754_v2 = vld [vmem:[#allocation14 + $0xb8] sm:$0xff]  ;;  %v749_v9 = vld [vmem:[#allocation14 + $0x90] sm:$0xff] }
 0x1dd   :  { %v2542_v7 = vpack.c.bf16 %v754_v2, %v750_v1  ;;  %v825_v1 = vld [vmem:[#allocation14 + $0x2f0] sm:$0xff]  ;;  %v830_v2 = vld [vmem:[#allocation14 + $0x318] sm:$0xff] }
 0x1de   :  { %2469 = vmatpush1.bf16.msra.mxu1 %v2468_v12  ;;  %v808_v12 = vld [vmem:[#allocation14 + $0x268] sm:$0xff] }
 0x1df   :  { %2535 = vmatprep.subr.bf16.mxu1 %v2534_v20  ;;  %v2506_v13 = vpack.c.bf16 %v808_v12, %v804_v11  ;;  %v811_v20 = vld [vmem:[#allocation14 + $0x280] sm:$0xff]  ;;  %v758_v11 = vld [vmem:[#allocation14 + $0xd8] sm:$0xff] }
 0x1e0   :  { %v762_v12 = vld [vmem:[#allocation14 + $0xf8] sm:$0xff] }
 0x1e1   :  { %v2546_v14 = vpack.c.bf16 %v762_v12, %v758_v11  ;;  %v833_v11 = vld [vmem:[#allocation14 + $0x330] sm:$0xff]  ;;  %v838_v12 = vld [vmem:[#allocation14 + $0x358] sm:$0xff] }
 0x274   :  { %v428_v57 = vpop.f32.mrb[0].mxu1 }
 0x275   :  { %v429_v58 = vadd.f32 %v428_v57, %v355_v55  ;;  %v430_v59 = vpop.f32.mrb[1].mxu1  ;;  %v779_v55 = vld [vmem:[#allocation14 + $0x180] sm:$0xff] }
 0x276   :  { %v431_v60 = vadd.f32 %v430_v59, %v359_v56  ;;  %v783_v56 = vld [vmem:[#allocation14 + $0x1a0] sm:$0xff]  ;;  %v792_v59 = vld [vmem:[#allocation14 + $0x1e8] sm:$0xff] }
 0x277   :  { %v433_v62 = vmax.f32 %v429_v58, 0.0  ;;  %v2496_v57 = vpack.c.bf16 %v783_v56, %v779_v55  ;;  %v788_v58 = vld [vmem:[#allocation14 + $0x1c8] sm:$0xff]  ;;  %v742_v56 = vld [vmem:[#allocation14 + $0x58] sm:$0xff] }
 0x278   :  { %v434_v61 = vmax.f32 %v431_v60, 0.0  ;;  %v2498_v60 = vpack.c.bf16 %v792_v59, %v788_v58 }
 0x27a   :  { %575 = vmatprep.mubr.f32.mxu0 %v434_v61  ;;  %v787_v61 = vld [vmem:[#allocation14 + $0x1c0] sm:$0xff] }
 0x27b   :  { %576 = vmatmul.mubr.f32.vlgmr.msra.gmra.mrb[2].mxu0 %v433_v62  ;;  %v791_v62 = vld [vmem:[#allocation14 + $0x1e0] sm:$0xff] }
 0x27c   :  { %2473 = vmatpush1.bf16.msra.mxu0 %v2472_v21  ;;  %v2500_v63 = vpack.c.bf16 %v791_v62, %v787_v61  ;;  %v815_v21 = vld [vmem:[#allocation14 + $0x2a0] sm:$0xff]  ;;  %v741_v62 = vld [vmem:[#allocation14 + $0x50] sm:$0xff] }
 0x27d   :  { %2475 = vmatprep.subr.bf16.mxu0 %v2474_v24  ;;  %v2512_v22 = vpack.c.bf16 %v815_v21, %v811_v20  ;;  %v824_v24 = vld [vmem:[#allocation14 + $0x2e8] sm:$0xff]  ;;  %v2550_v20 = vpack.c.bf16 %v770_v18, %v766_v17  ;;  %v765_v21 = vld [vmem:[#allocation14 + $0x110] sm:$0xff]  ;;  %v846_v18 = vld [vmem:[#allocation14 + $0x398] sm:$0xff] }
 0x27e   :  { %v2514_v25 = vpack.c.bf16 %v824_v24, %v820_v23  ;;  %v774_v23 = vld [vmem:[#allocation14 + $0x158] sm:$0xff]  ;;  %v841_v17 = vld [vmem:[#allocation14 + $0x370] sm:$0xff] }
 0x27f   :  { %v778_v24 = vld [vmem:[#allocation14 + $0x178] sm:$0xff] }
 0x280   :  { %2477 = vmatpush1.bf16.msra.mxu0 %v2476_v27  ;;  %v823_v27 = vld [vmem:[#allocation14 + $0x2e0] sm:$0xff] }
 0x281   :  { %2479 = vmatprep.subr.bf16.mxu0 %v2478_v30  ;;  %v2516_v28 = vpack.c.bf16 %v823_v27, %v819_v26  ;;  %v832_v30 = vld [vmem:[#allocation14 + $0x328] sm:$0xff]  ;;  %v2554_v26 = vpack.c.bf16 %v778_v24, %v774_v23  ;;  %v773_v27 = vld [vmem:[#allocation14 + $0x150] sm:$0xff] }
 0x282   :  { %v2518_v31 = vpack.c.bf16 %v832_v30, %v828_v29  ;;  %v782_v29 = vld [vmem:[#allocation14 + $0x198] sm:$0xff]  ;;  %v849_v23 = vld [vmem:[#allocation14 + $0x3b0] sm:$0xff] }
 0x283   :  { %v786_v30 = vld [vmem:[#allocation14 + $0x1b8] sm:$0xff] }
 0x284   :  { %2481 = vmatpush1.bf16.msra.mxu0 %v2480_v33  ;;  %v831_v33 = vld [vmem:[#allocation14 + $0x320] sm:$0xff] }
 0x285   :  { %2483 = vmatprep.subr.bf16.mxu0 %v2482_v36  ;;  %v2520_v34 = vpack.c.bf16 %v831_v33, %v827_v32  ;;  %v840_v36 = vld [vmem:[#allocation14 + $0x368] sm:$0xff]  ;;  %v2558_v32 = vpack.c.bf16 %v786_v30, %v782_v29  ;;  %v781_v33 = vld [vmem:[#allocation14 + $0x190] sm:$0xff]  ;;  %v858_v29 = vld [vmem:[#allocation14 + $0x3f8] sm:$0xff] }
 0x286   :  { %v2522_v37 = vpack.c.bf16 %v840_v36, %v836_v35  ;;  %v790_v35 = vld [vmem:[#allocation14 + $0x1d8] sm:$0xff]  ;;  %v851_v30 = vld [vmem:[#allocation14 + $0x3c0] sm:$0xff] }
 0x287   :  { %v794_v36 = vld [vmem:[#allocation14 + $0x1f8] sm:$0xff] }
 0x288   :  { %2485 = vmatpush1.bf16.msra.mxu0 %v2484_v39  ;;  %v839_v39 = vld [vmem:[#allocation14 + $0x360] sm:$0xff] }
 0x289   :  { %2487 = vmatprep.subr.bf16.mxu0 %v2486_v42  ;;  %v2524_v40 = vpack.c.bf16 %v839_v39, %v835_v38  ;;  %v848_v42 = vld [vmem:[#allocation14 + $0x3a8] sm:$0xff]  ;;  %v2562_v38 = vpack.c.bf16 %v794_v36, %v790_v35  ;;  %v789_v39 = vld [vmem:[#allocation14 + $0x1d0] sm:$0xff] }
 0x28a   :  { %v2526_v43 = vpack.c.bf16 %v848_v42, %v844_v41  ;;  %v798_v41 = vld [vmem:[#allocation14 + $0x218] sm:$0xff]  ;;  %v857_v35 = vld [vmem:[#allocation14 + $0x3f0] sm:$0xff] }
 0x28b   :  { %v802_v42 = vld [vmem:[#allocation14 + $0x238] sm:$0xff] }
 0x28c   :  { %2489 = vmatpush1.bf16.msra.mxu0 %v2488_v45  ;;  %v847_v45 = vld [vmem:[#allocation14 + $0x3a0] sm:$0xff] }
 0x28d   :  { %2491 = vmatprep.subr.bf16.mxu0 %v2490_v48  ;;  %v2528_v46 = vpack.c.bf16 %v847_v45, %v843_v44  ;;  %v504_v48 = vrot.slane %v499_v47, %v3315_v6  ;;  %v2566_v44 = vpack.c.bf16 %v802_v42, %v798_v41  ;;  %v797_v45 = vld [vmem:[#allocation14 + $0x210] sm:$0xff]  ;;  %v806_v47 = vld [vmem:[#allocation14 + $0x258] sm:$0xff]  ;;  %v1026_v41 = vld [vmem:[#allocation17] sm:$0xff] }
 0x28e   :  { %v1027_v42 = vld [vmem:[#allocation17 + $0x8] sm:$0xff] }
 0x290   :  { %2493 = vmatpush1.bf16.msra.mxu0 %v2492_v51 }
 0x291   :  { %2495 = vmatprep.subr.bf16.mxu0 %v2494_v54  ;;  %v737_v54 = vld [vmem:[#allocation14 + $0x30] sm:$0xff] }
 0x292   :  { %v2536_v59 = vpack.c.bf16 %v737_v54, %v733_v53  ;;  %v814_v53 = vld [vmem:[#allocation14 + $0x298] sm:$0xff] }
 0x293   :  { %v818_v54 = vld [vmem:[#allocation14 + $0x2b8] sm:$0xff] }
 0x294   :  { %2497 = vmatpush1.bf16.msra.mxu0 %v2496_v57  ;;  %v746_v57 = vld [vmem:[#allocation14 + $0x78] sm:$0xff] }
 0x295   :  { %2499 = vmatprep.subr.bf16.mxu0 %v2498_v60  ;;  %v2538_v61 = vpack.c.bf16 %v746_v57, %v742_v56  ;;  %v2574_v56 = vpack.c.bf16 %v818_v54, %v814_v53  ;;  %v813_v57 = vld [vmem:[#allocation14 + $0x290] sm:$0xff] }
 0x296   :  { %v1032_v54 = vld [vmem:[#allocation17 + $0x30] sm:$0xff] }
 0x298   :  { %2501 = vmatpush1.bf16.msra.mxu0 %v2500_v63  ;;  %v745_v63 = vld [vmem:[#allocation14 + $0x70] sm:$0xff] }
 0x299   :  { %2503 = vmatprep.subr.bf16.mxu0 %v2502_v3  ;;  %v2540_v3 = vpack.c.bf16 %v745_v63, %v741_v62  ;;  %v821_v63 = vld [vmem:[#allocation14 + $0x2d0] sm:$0xff] }
 0x29c   :  { %2505 = vmatpush1.bf16.msra.mxu0 %v2504_v10  ;;  %v753_v10 = vld [vmem:[#allocation14 + $0xb0] sm:$0xff] }
 0x29d   :  { %2507 = vmatprep.subr.bf16.mxu0 %v2506_v13  ;;  %v2544_v13 = vpack.c.bf16 %v753_v10, %v749_v9  ;;  %v829_v10 = vld [vmem:[#allocation14 + $0x310] sm:$0xff] }
 0x2a0   :  { %2509 = vmatpush1.bf16.msra.mxu0 %v2508_v16  ;;  %v761_v16 = vld [vmem:[#allocation14 + $0xf0] sm:$0xff] }
 0x2a1   :  { %2511 = vmatprep.subr.bf16.mxu0 %v2510_v19  ;;  %v2548_v19 = vpack.c.bf16 %v761_v16, %v757_v15  ;;  %v837_v16 = vld [vmem:[#allocation14 + $0x350] sm:$0xff] }
 0x2a4   :  { %2513 = vmatpush1.bf16.msra.mxu0 %v2512_v22  ;;  %v769_v22 = vld [vmem:[#allocation14 + $0x130] sm:$0xff] }
 0x2a5   :  { %2515 = vmatprep.subr.bf16.mxu0 %v2514_v25  ;;  %v2552_v25 = vpack.c.bf16 %v769_v22, %v765_v21  ;;  %v845_v22 = vld [vmem:[#allocation14 + $0x390] sm:$0xff] }
 0x2a6   :  { %v2592_v24 = vpack.c.bf16 %v849_v23, %v845_v22 }
 0x2a8   :  { %2517 = vmatpush1.bf16.msra.mxu0 %v2516_v28  ;;  %v777_v28 = vld [vmem:[#allocation14 + $0x170] sm:$0xff] }
 0x2a9   :  { %2519 = vmatprep.subr.bf16.mxu0 %v2518_v31  ;;  %v2556_v31 = vpack.c.bf16 %v777_v28, %v773_v27  ;;  %v854_v27 = vld [vmem:[#allocation14 + $0x3d8] sm:$0xff] }
 0x2ac   :  { %2521 = vmatpush1.bf16.msra.mxu0 %v2520_v34  ;;  %v785_v34 = vld [vmem:[#allocation14 + $0x1b0] sm:$0xff] }
 0x2ad   :  { %2523 = vmatprep.subr.bf16.mxu0 %v2522_v37  ;;  %v2560_v37 = vpack.c.bf16 %v785_v34, %v781_v33  ;;  %v853_v34 = vld [vmem:[#allocation14 + $0x3d0] sm:$0xff] }
 0x2ae   :  { %v2596_v36 = vpack.c.bf16 %v857_v35, %v853_v34  ;;  %v1165_v34 = vld [vmem:[#allocation16] sm:$0xff]  ;;  %v1166_v35 = vld [vmem:[#allocation16 + $0x8] sm:$0xff] }
 0x2b0   :  { %2525 = vmatpush1.bf16.msra.mxu0 %v2524_v40  ;;  %v793_v40 = vld [vmem:[#allocation14 + $0x1f0] sm:$0xff] }
 0x2b1   :  { %2527 = vmatprep.subr.bf16.mxu0 %v2526_v43  ;;  %v2564_v43 = vpack.c.bf16 %v793_v40, %v789_v39 }
 0x2b4   :  { %2529 = vmatpush1.bf16.msra.mxu0 %v2528_v46  ;;  %v801_v46 = vld [vmem:[#allocation14 + $0x230] sm:$0xff] }
 0x34e   :  { %v577_v50 = vpop.f32.mrb[2].mxu0 }
 0x34f   :  { %v578_v51 = vadd.f32 %v577_v50, %v504_v48  ;;  %v579_v52 = vpop.f32.mrb[3].mxu0  ;;  %v810_v48 = vld [vmem:[#allocation14 + $0x278] sm:$0xff] }
 0x350   :  { %v580_v55 = vadd.f32 %v579_v52, %v508_v49  ;;  %v2568_v49 = vpack.c.bf16 %v801_v46, %v797_v45  ;;  %v2570_v50 = vpack.c.bf16 %v810_v48, %v806_v47  ;;  %v809_v52 = vld [vmem:[#allocation14 + $0x270] sm:$0xff]  ;;  %v2599_v46 = vpack.c.bf16 %v1027_v42, %v1026_v41  ;;  %v1170_v41 = vld [vmem:[#allocation16 + $0x28] sm:$0xff] }
 0x351   :  { %v582_v60 = vmax.f32 %v578_v51, 0.0  ;;  %v805_v51 = vld [vmem:[#allocation14 + $0x250] sm:$0xff] }
 0x352   :  { %v583_v58 = vmax.f32 %v580_v55, 0.0  ;;  %v2572_v55 = vpack.c.bf16 %v809_v52, %v805_v51  ;;  %v1028_v48 = vld [vmem:[#allocation17 + $0x10] sm:$0xff]  ;;  %v1030_v51 = vld [vmem:[#allocation17 + $0x20] sm:$0xff]  ;;  %v1031_v52 = vld [vmem:[#allocation17 + $0x28] sm:$0xff] }
 0x353   :  { %v2605_v53 = vpack.c.bf16 %v1031_v52, %v1030_v51  ;;  %v1177_v52 = vld [vmem:[#allocation16 + $0x60] sm:$0xff] }
 0x354   :  { %724 = vmatprep.mubr.f32.mxu1 %v583_v58  ;;  %v817_v58 = vld [vmem:[#allocation14 + $0x2b0] sm:$0xff] }
 0x355   :  { %725 = vmatmul.mubr.f32.vlgmr.msra.gmra.mrb[2].mxu1 %v582_v60  ;;  %v826_v60 = vld [vmem:[#allocation14 + $0x2f8] sm:$0xff] }
 0x356   :  { %2537 = vmatpush1.bf16.msra.mxu1 %v2536_v59  ;;  %v822_v59 = vld [vmem:[#allocation14 + $0x2d8] sm:$0xff] }
 0x357   :  { %2539 = vmatprep.subr.bf16.mxu1 %v2538_v61  ;;  %v2576_v61 = vpack.c.bf16 %v817_v58, %v813_v57  ;;  %v2578_v62 = vpack.c.bf16 %v826_v60, %v822_v59  ;;  %v1034_v57 = vld [vmem:[#allocation17 + $0x40] sm:$0xff]  ;;  %v1035_v58 = vld [vmem:[#allocation17 + $0x48] sm:$0xff]  ;;  %v1036_v60 = vld [vmem:[#allocation17 + $0x50] sm:$0xff] }
 0x358   :  { %v2611_v59 = vpack.c.bf16 %v1035_v58, %v1034_v57 }
 0x35a   :  { %2541 = vmatpush1.bf16.msra.mxu1 %v2540_v3  ;;  %v834_v3 = vld [vmem:[#allocation14 + $0x338] sm:$0xff] }
 0x35b   :  { %2543 = vmatprep.subr.bf16.mxu1 %v2542_v7  ;;  %v2580_v7 = vpack.c.bf16 %v825_v1, %v821_v63  ;;  %v2582_v9 = vpack.c.bf16 %v834_v3, %v830_v2  ;;  %v1038_v63 = vld [vmem:[#allocation17 + $0x60] sm:$0xff]  ;;  %v1039_v1 = vld [vmem:[#allocation17 + $0x68] sm:$0xff]  ;;  %v1040_v3 = vld [vmem:[#allocation17 + $0x70] sm:$0xff] }
 0x35c   :  { %v2617_v2 = vpack.c.bf16 %v1039_v1, %v1038_v63 }
 0x35e   :  { %2545 = vmatpush1.bf16.msra.mxu1 %v2544_v13  ;;  %v842_v13 = vld [vmem:[#allocation14 + $0x378] sm:$0xff] }
 0x35f   :  { %2547 = vmatprep.subr.bf16.mxu1 %v2546_v14  ;;  %v2584_v14 = vpack.c.bf16 %v833_v11, %v829_v10  ;;  %v2586_v15 = vpack.c.bf16 %v842_v13, %v838_v12  ;;  %v3348_v10 = vld [vmem:[%s3530_s10] sm:$0xf] }
 0x360   :  { %v864_v11 = vrot.slane %v3348_v10, %v3315_v6 }
 0x362   :  { %2549 = vmatpush1.bf16.msra.mxu1 %v2548_v19  ;;  %v850_v19 = vld [vmem:[#allocation14 + $0x3b8] sm:$0xff] }
 0x363   :  { %2551 = vmatprep.subr.bf16.mxu1 %v2550_v20  ;;  %v2588_v20 = vpack.c.bf16 %v841_v17, %v837_v16  ;;  %v2590_v21 = vpack.c.bf16 %v850_v19, %v846_v18  ;;  %v1890_v18 = vld [vmem:[%s3533_s13] ss:$0 sm:$0xff] }
 0x366   :  { %2553 = vmatpush1.bf16.msra.mxu1 %v2552_v25  ;;  %v852_v25 = vld [vmem:[#allocation14 + $0x3c8] sm:$0xff] }
 0x367   :  { %2555 = vmatprep.subr.bf16.mxu1 %v2554_v26  ;;  %v856_v26 = vld [vmem:[#allocation14 + $0x3e8] sm:$0xff] }
 0x368   :  { %v2530_v28 = vpack.c.bf16 %v856_v26, %v852_v25 }
 0x36a   :  { %2557 = vmatpush1.bf16.msra.mxu1 %v2556_v31  ;;  %v855_v31 = vld [vmem:[#allocation14 + $0x3e0] sm:$0xff]  ;;  %2531 = vmatprep.subr.bf16.mxu0 %v2530_v28 }
 0x36b   :  { %2559 = vmatprep.subr.bf16.mxu1 %v2558_v32  ;;  %v2594_v32 = vpack.c.bf16 %v858_v29, %v854_v27  ;;  %v2532_v33 = vpack.c.bf16 %v855_v31, %v851_v30 }
 0x36d   :  { %2533 = vmatpush1.bf16.msra.mxu0 %v2532_v33  ;;  %v3064_v33 = vmov 0  }
 0x36e   :  { %2561 = vmatpush1.bf16.msra.mxu1 %v2560_v37  ;;  %v3062_v37 = vmov 0.0|0.0   ;;  %2787 = vset.pattern.permute.xlu1 %v3064_v33 }
 0x36f   :  { %2563 = vmatprep.subr.bf16.mxu1 %v2562_v38  ;;  %2598 = vmatprep.subr.bf16.mxu0 %v3062_v37  ;;  %v648_v38 = vld [vmem:[#allocation13] sm:$0x3] }
 0x370   :  { %v657_v39 = vrot.slane %v648_v38, %v3321_v8  ;;  %v653_v40 = vrot.slane %v648_v38, %v3315_v6  ;;  %2788 = vset.pattern.permute.xlu0 %v3064_v33  ;;  %v1168_v38 = vld [vmem:[#allocation16 + $0x18] sm:$0xff]  ;;  %v1267_v33 = vld [vmem:[#allocation17 + $0xe8] sm:$0xff] }
 0x372   :  { %2565 = vmatpush1.bf16.msra.mxu1 %v2564_v43 }
 0x373   :  { %2567 = vmatprep.subr.bf16.mxu1 %v2566_v44 }
 0x376   :  { %2569 = vmatpush1.bf16.msra.mxu1 %v2568_v49  ;;  %v1029_v49 = vld [vmem:[#allocation17 + $0x18] sm:$0xff] }
 0x377   :  { %2571 = vmatprep.subr.bf16.mxu1 %v2570_v50  ;;  %v2602_v50 = vpack.c.bf16 %v1029_v49, %v1028_v48  ;;  %v1175_v49 = vld [vmem:[#allocation16 + $0x50] sm:$0xff] }
 0x37a   :  { %2573 = vmatpush1.bf16.msra.mxu1 %v2572_v55  ;;  %v1033_v55 = vld [vmem:[#allocation17 + $0x38] sm:$0xff] }
 0x37b   :  { %2575 = vmatprep.subr.bf16.mxu1 %v2574_v56  ;;  %v2608_v56 = vpack.c.bf16 %v1033_v55, %v1032_v54 }
 0x37e   :  { %2577 = vmatpush1.bf16.msra.mxu1 %v2576_v61  ;;  %v1037_v61 = vld [vmem:[#allocation17 + $0x58] sm:$0xff] }
 0x37f   :  { %2579 = vmatprep.subr.bf16.mxu1 %v2578_v62  ;;  %v2614_v62 = vpack.c.bf16 %v1037_v61, %v1036_v60  ;;  %v1140_v60 = vld [vmem:[%s3537_s17] sm:$0xff] }
 0x382   :  { %2581 = vmatpush1.bf16.msra.mxu1 %v2580_v7  ;;  %v1041_v7 = vld [vmem:[#allocation17 + $0x78] sm:$0xff] }
 0x383   :  { %2583 = vmatprep.subr.bf16.mxu1 %v2582_v9  ;;  %v2620_v9 = vpack.c.bf16 %v1041_v7, %v1040_v3  ;;  %v1180_v3 = vld [vmem:[#allocation16 + $0x78] sm:$0xff] }
 0x386   :  { %2585 = vmatpush1.bf16.msra.mxu1 %v2584_v14 }
 0x387   :  { %2587 = vmatprep.subr.bf16.mxu1 %v2586_v15 }
 0x38a   :  { %2589 = vmatpush1.bf16.msra.mxu1 %v2588_v20  ;;  %v1119_v20 = vld [vmem:[%s3536_s16] sm:$0xff] }
 0x38b   :  { %2591 = vmatprep.subr.bf16.mxu1 %v2590_v21 }
 0x38e   :  { %2593 = vmatpush1.bf16.msra.mxu1 %v2592_v24  ;;  %v3367_v24 = vand.u32 127, %v199_v4  ;;  %v1167_v4 = vld [vmem:[#allocation16 + $0x10] sm:$0xff] }
 0x38f   :  { %2595 = vmatprep.subr.bf16.mxu1 %v2594_v32 }
 0x390   :  { %vm1144_vm10 = vcmp.eq.s32.totalorder %v3367_v24, 0  ;;  %vm1375_vm11 = vcmp.eq.s32.totalorder %v3367_v24, 1  ;;  %vm1615_vm12 = vcmp.eq.s32.totalorder %v3367_v24, 2  ;;  %vm1861_vm13 = vcmp.eq.s32.totalorder %v3367_v24, 3 }
 0x392   :  { %2597 = vmatpush1.bf16.msra.mxu1 %v2596_v36  ;;  %v2623_v36 = vpack.c.bf16 %v1166_v35, %v1165_v34  ;;  %v1151_v35 = vld [vmem:[%s3534_s14] sm:$0xf] }
 0x393   :  { %2646 = vmatprep.subr.bf16.mxu1 %v3062_v37 }
 0x428   :  { %v726_v43 = vpop.f32.mrb[2].mxu1 }
 0x429   :  { %v728_v44 = vpop.f32.mrb[3].mxu1  ;;  %v727_v47 = vadd.f32 %v726_v43, %v653_v40  ;;  %v1169_v40 = vld [vmem:[#allocation16 + $0x20] sm:$0xff]  ;;  %v1171_v43 = vld [vmem:[#allocation16 + $0x30] sm:$0xff] }
 0x42a   :  { %v729_v45 = vadd.f32 %v728_v44, %v657_v39  ;;  %v2626_v39 = vpack.c.bf16 %v1168_v38, %v1167_v4  ;;  %v2629_v42 = vpack.c.bf16 %v1170_v41, %v1169_v40  ;;  %v1172_v44 = vld [vmem:[#allocation16 + $0x38] sm:$0xff]  ;;  %v1156_v4 = vrot.slane %v1151_v35, %v3315_v6  ;;  %v1891_v38 = vld [vmem:[%s3535_s15] ss:$0 sm:$0xff]  ;;  %v1268_v41 = vld [vmem:[#allocation17 + $0xf0] sm:$0xff] }
 0x42b   :  { %v1895_v35 = vld [vmem:[%s3537_s17 + $0x8] sm:$0xff] }
 0x42c   :  { %945 = vmatprep.mubr.f32.mxu0 %v729_v45  ;;  %1016 = vmatprep.mubr.f32.mxu1 %v729_v45  ;;  %v2632_v45 = vpack.c.bf16 %v1172_v44, %v1171_v43  ;;  %v868_v44 = vrot.slane %v3348_v10, %v3321_v8 }
 0x42d   :  { %946 = vmatmul.mubr.f32.vlgmr.msra.gmra.mrb[4].mxu0 %v727_v47  ;;  %1017 = vmatmul.mubr.f32.vlgmr.msra.gmra.mrb[4].mxu1 %v727_v47  ;;  %v1174_v47 = vld [vmem:[#allocation16 + $0x48] sm:$0xff] }
 0x42e   :  { %2600 = vmatpush3.bf16.msra.mxu0 %v2599_v46  ;;  %2061 = vmatprep.mubr.msk.f32.mxu0 %vm3063_vm1, %v3061_v0  ;;  %v1173_v46 = vld [vmem:[#allocation16 + $0x40] sm:$0xff] }
 0x42f   :  { %2601 = vmatprep.subr.bf16.mxu0 %v3062_v37  ;;  %2131 = vmatprep.mubr.msk.f32.mxu1 %vm3063_vm1, %v3061_v0  ;;  %v2635_v48 = vpack.c.bf16 %v1174_v47, %v1173_v46 }
 0x432   :  { %2603 = vmatpush3.bf16.msra.mxu0 %v2602_v50  ;;  %v1176_v50 = vld [vmem:[#allocation16 + $0x58] sm:$0xff] }
 0x433   :  { %2604 = vmatprep.subr.bf16.mxu0 %v3062_v37  ;;  %v2638_v51 = vpack.c.bf16 %v1176_v50, %v1175_v49  ;;  %v1893_v50 = vld [vmem:[%s3533_s13 + $0x1] ss:$0 sm:$0xff] }
 0x436   :  { %2606 = vmatpush3.bf16.msra.mxu0 %v2605_v53  ;;  %v1178_v53 = vld [vmem:[#allocation16 + $0x68] sm:$0xff] }
 0x437   :  { %2607 = vmatprep.subr.bf16.mxu0 %v3062_v37  ;;  %v2641_v54 = vpack.c.bf16 %v1178_v53, %v1177_v52  ;;  %v1894_v52 = vld [vmem:[%s3536_s16 + $0x8] sm:$0xff] }
 0x43a   :  { %2609 = vmatpush3.bf16.msra.mxu0 %v2608_v56 }
 0x43b   :  { %2610 = vmatprep.subr.bf16.mxu0 %v3062_v37 }
 0x43e   :  { %2612 = vmatpush3.bf16.msra.mxu0 %v2611_v59 }
 0x43f   :  { %2613 = vmatprep.subr.bf16.mxu0 %v3062_v37 }
 0x442   :  { %2615 = vmatpush3.bf16.msra.mxu0 %v2614_v62 }
 0x443   :  { %2616 = vmatprep.subr.bf16.mxu0 %v3062_v37 }
 0x446   :  { %2618 = vmatpush3.bf16.msra.mxu0 %v2617_v2  ;;  %v1179_v2 = vld [vmem:[#allocation16 + $0x70] sm:$0xff] }
 0x447   :  { %2619 = vmatprep.subr.bf16.mxu0 %v3062_v37  ;;  %v2644_v7 = vpack.c.bf16 %v1180_v3, %v1179_v2  ;;  %v1407_v2 = vld [vmem:[#allocation16 + $0x90] sm:$0xff] }
 0x44a   :  { %2621 = vmatpush3.bf16.msra.mxu0 %v2620_v9  ;;  %v1254_v9 = vld [vmem:[#allocation17 + $0x80] sm:$0xff] }
 0x44b   :  { %2622 = vmatprep.subr.bf16.mxu0 %v3062_v37 }
 0x500   :  { %v947_v12 = vpop.f32.mrb[4].mxu0  ;;  %v3352_v13 = vpop.f32.mrb[4].mxu1 }
 0x501   :  { %v948_v14 = vadd.f32 %v947_v12, %v864_v11  ;;  %v3354_v15 = vpop.f32.mrb[5].mxu0  ;;  %v3356_v16 = vpop.f32.mrb[5].mxu1  ;;  %v1255_v11 = vld [vmem:[#allocation17 + $0x88] sm:$0xff]  ;;  %v1256_v12 = vld [vmem:[#allocation17 + $0x90] sm:$0xff] }
 0x503   :  { %v1025_v17 = vmax.f32 %v948_v14, 0.0  ;;  %v2647_v14 = vpack.c.bf16 %v1255_v11, %v1254_v9  ;;  %v1409_v11 = vld [vmem:[#allocation16 + $0xa0] sm:$0xff] }
 0x505   :  { %2062 = vmatmul.mubr.f32.vlgmr.msra.gmra.mrb[6].mxu0 %v1025_v17  ;;  %v1257_v17 = vld [vmem:[#allocation17 + $0x98] sm:$0xff]  ;;  %2648 = vmatpush3.bf16.msra.mxu1 %v2647_v14 }
 0x506   :  { %2096 = vmatprep.mubr.msk.f32.mxu0 %vm3063_vm1, %v3061_v0  ;;  %2624 = vmatpush3.bf16.msra.mxu0 %v2623_v36 }
 0x507   :  { %2625 = vmatprep.subr.bf16.mxu0 %v3062_v37  ;;  %2649 = vmatprep.subr.bf16.mxu1 %v3062_v37 }
 0x50a   :  { %2627 = vmatpush3.bf16.msra.mxu0 %v2626_v39 }
 0x50b   :  { %2628 = vmatprep.subr.bf16.mxu0 %v3062_v37 }
 0x50e   :  { %2630 = vmatpush3.bf16.msra.mxu0 %v2629_v42  ;;  %v1269_v42 = vld [vmem:[#allocation17 + $0xf8] sm:$0xff] }
 0x50f   :  { %2631 = vmatprep.subr.bf16.mxu0 %v3062_v37  ;;  %v2668_v43 = vpack.c.bf16 %v1269_v42, %v1268_v41  ;;  %v1419_v41 = vld [vmem:[#allocation16 + $0xf0] sm:$0xff]  ;;  %v1420_v42 = vld [vmem:[#allocation16 + $0xf8] sm:$0xff] }
 0x512   :  { %2633 = vmatpush3.bf16.msra.mxu0 %v2632_v45  ;;  %v950_v45 = vadd.f32 %v3354_v15, %v868_v44  ;;  %v1494_v44 = vld [vmem:[#allocation17 + $0x100] sm:$0xff] }
 0x513   :  { %2634 = vmatprep.subr.bf16.mxu0 %v3062_v37 }
 0x516   :  { %2636 = vmatpush3.bf16.msra.mxu0 %v2635_v48 }
 0x517   :  { %2637 = vmatprep.subr.bf16.mxu0 %v3062_v37 }
 0x51a   :  { %2639 = vmatpush3.bf16.msra.mxu0 %v2638_v51 }
 0x51b   :  { %2640 = vmatprep.subr.bf16.mxu0 %v3062_v37 }
 0x51e   :  { %2642 = vmatpush3.bf16.msra.mxu0 %v2641_v54 }
 0x51f   :  { %2643 = vmatprep.subr.bf16.mxu0 %v3062_v37 }
 0x522   :  { %2645 = vmatpush3.bf16.msra.mxu0 %v2644_v7  ;;  %v1408_v7 = vld [vmem:[#allocation16 + $0x98] sm:$0xff] }
 0x523   :  { %2670 = vmatprep.subr.bf16.mxu0 %v3062_v37  ;;  %v2674_v9 = vpack.c.bf16 %v1408_v7, %v1407_v2 }
 0x5d8   :  { %v1115_v19 = vpop.f32.mrb[6].mxu0 }
 0x5d9   :  { %v1116_v21 = vadd.f32 %v1890_v18, %v1115_v19  ;;  %v2063_v22 = vpop.f32.mrb[7].mxu0  ;;  %v2650_v18 = vpack.c.bf16 %v1257_v17, %v1256_v12  ;;  %v1258_v19 = vld [vmem:[#allocation17 + $0xa0] sm:$0xff]  ;;  %v1410_v12 = vld [vmem:[#allocation16 + $0xa8] sm:$0xff]  ;;  %v1411_v17 = vld [vmem:[#allocation16 + $0xb0] sm:$0xff] }
 0x5da   :  { %v1260_v22 = vld [vmem:[#allocation17 + $0xb0] sm:$0xff]  ;;  %v2677_v14 = vpack.c.bf16 %v1410_v12, %v1409_v11 }
 0x5db   :  { %v1120_v23 = vadd.f32 %v1119_v20, %v1116_v21  ;;  %v1259_v20 = vld [vmem:[#allocation17 + $0xa8] sm:$0xff]  ;;  %2651 = vmatpush3.bf16.msra.mxu1 %v2650_v18  ;;  %v1412_v18 = vld [vmem:[#allocation16 + $0xb8] sm:$0xff] }
 0x5dc   :  { %v2653_v21 = vpack.c.bf16 %v1259_v20, %v1258_v19  ;;  %2652 = vmatprep.subr.bf16.mxu1 %v3062_v37  ;;  %v2680_v19 = vpack.c.bf16 %v1412_v18, %v1411_v17  ;;  %v1413_v20 = vld [vmem:[#allocation16 + $0xc0] sm:$0xff]  ;;  %v1508_v18 = vld [vmem:[#allocation17 + $0x170] sm:$0xff] }
 0x5dd   :  { %1121 = vmax.xlane.f32.xlu0 %v1120_v23 }
 0x5df   :  { %2654 = vmatpush3.bf16.msra.mxu1 %v2653_v21  ;;  %v1414_v21 = vld [vmem:[#allocation16 + $0xc8] sm:$0xff] }
 0x5e0   :  { %2655 = vmatprep.subr.bf16.mxu1 %v3062_v37 }
 0x66a   :  { %v1122_v25 = vpop.xlane.xlu0 %1121 }
 0x66b   :  { %vm1123_vm2 = vcmp.ge.f32.partialorder %v1120_v23, %v1122_v25  ;;  %v1261_v23 = vld [vmem:[#allocation17 + $0xb8] sm:$0xff] }
 0x66c   :  { %v1124_v26 = vsel %vm1123_vm2, %v3367_v24, 128  ;;  %v2656_v25 = vpack.c.bf16 %v1261_v23, %v1260_v22  ;;  %v2683_v22 = vpack.c.bf16 %v1414_v21, %v1413_v20  ;;  %v1415_v23 = vld [vmem:[#allocation16 + $0xd0] sm:$0xff]  ;;  %v871_v21 = vsub.s32 2, %v3312_v5 }
 0x66d   :  { %v1126_v27 = vshra.s32 %v1124_v26, 16  ;;  %v1125_v29 = vand.u32 65535, %v1124_v26  ;;  %v1262_v26 = vld [vmem:[#allocation17 + $0xc0] sm:$0xff] }
 0x66e   :  { %2657 = vmatpush3.bf16.msra.mxu1 %v2656_v25  ;;  %v1416_v25 = vld [vmem:[#allocation16 + $0xd8] sm:$0xff] }
 0x66f   :  { %v1128_v28 = vcvt.s32.f32 %v1126_v27  ;;  %v1127_v31 = vcvt.s32.f32 %v1125_v29  ;;  %v1263_v27 = vld [vmem:[#allocation17 + $0xc8] sm:$0xff]  ;;  %2658 = vmatprep.subr.bf16.mxu1 %v3062_v37  ;;  %v1264_v29 = vld [vmem:[#allocation17 + $0xd0] sm:$0xff] }
 0x671   :  { %1129 = vmin.xlane.f32.xlu0 %v1128_v28 }
 0x6fe   :  { %v1130_v30 = vpop.xlane.xlu0 %1129 }
 0x6ff   :  { %vm1131_vm3 = vcmp.eq.f32.partialorder %v1128_v28, %v1130_v30  ;;  %v1136_v55 = vcvt.f32.s32 %v1130_v30  ;;  %v2659_v28 = vpack.c.bf16 %v1263_v27, %v1262_v26  ;;  %v1265_v30 = vld [vmem:[#allocation17 + $0xd8] sm:$0xff]  ;;  %v2686_v26 = vpack.c.bf16 %v1416_v25, %v1415_v23  ;;  %v1417_v27 = vld [vmem:[#allocation16 + $0xe0] sm:$0xff] }
 0x700   :  { %v1132_v32 = vsel %vm1131_vm3, %v1127_v31, inf  ;;  %v2662_v31 = vpack.c.bf16 %v1265_v30, %v1264_v29 }
 0x701   :  { %1133 = vmin.xlane.f32.xlu1 %v1132_v32  ;;  %v1137_v57 = vshll.u32 %v1136_v55, 16  ;;  %2660 = vmatpush3.bf16.msra.mxu1 %v2659_v28  ;;  %v1266_v32 = vld [vmem:[#allocation17 + $0xe0] sm:$0xff]  ;;  %v1418_v28 = vld [vmem:[#allocation16 + $0xe8] sm:$0xff] }
 0x702   :  { %2661 = vmatprep.subr.bf16.mxu1 %v3062_v37  ;;  %v2665_v34 = vpack.c.bf16 %v1267_v33, %v1266_v32  ;;  %v2689_v29 = vpack.c.bf16 %v1418_v28, %v1417_v27 }
 0x705   :  { %2663 = vmatpush3.bf16.msra.mxu1 %v2662_v31 }
 0x706   :  { %2664 = vmatprep.subr.bf16.mxu1 %v3062_v37 }
 0x709   :  { %2666 = vmatpush3.bf16.msra.mxu1 %v2665_v34 }
 0x70a   :  { %2667 = vmatprep.subr.bf16.mxu1 %v3062_v37 }
 0x70d   :  { %2669 = vmatpush3.bf16.msra.mxu1 %v2668_v43  ;;  %v2692_v43 = vpack.c.bf16 %v1420_v42, %v1419_v41  ;;  %v1651_v42 = vld [vmem:[#allocation16 + $0x100] sm:$0xff] }
 0x70e   :  { %2694 = vmatprep.subr.bf16.mxu1 %v3062_v37 }
 0x78e   :  { %v1134_v56 = vpop.xlane.xlu1 %1133 }
 0x78f   :  { %v1135_v58 = vcvt.f32.s32 %v1134_v56 }
 0x791   :  { %v1138_v59 = vadd.s32 %v1137_v57, %v1135_v58 }
 0x793   :  { %v1139_v61 = vcvt.s32.f32 %v1138_v59 }
 0x795   :  { %v1141_v62 = vadd.f32 %v1140_v60, %v1139_v61 }
 0x797   :  { %v1142_v63 = vmul.f32 0.025, %v1141_v62 }
 0x799   :  { %v1143_v1 = vadd.f32 -1.0, %v1142_v63  ;;  %v1405_v63 = vld [vmem:[#allocation16 + $0x80] sm:$0xff] }
 0x79b   :  { %1147 = vperm.xlu1 %2787, %v1143_v1   ;;  %v1406_v1 = vld [vmem:[#allocation16 + $0x88] sm:$0xff] }
 0x79c   :  { %v2671_v3 = vpack.c.bf16 %v1406_v1, %v1405_v63  ;;  %v1896_v1 = vld [vmem:[%s3534_s14 + $0x4] sm:$0xf] }
 0x79d   :  { %v1389_v2 = vrot.slane %v1896_v1, %v3315_v6  ;;  %v1401_v7 = vrot.slane %v1896_v1, %v3321_v8 }
 0x81a   :  { %v3392_v36 = vpop.permute.xlu1 %1147 }
 0x81b   :  { %v1157_v39 = vmul.f32 %v1156_v4, %v3392_v36 }
 0x81d   :  { %v1164_v40 = vadd.f32 %v1891_v38, %v1157_v39 }
 0x81f   :  { %2097 = vmatmul.mubr.f32.vlgmr.msra.gmra.mrb[8].mxu0 %v1164_v40 }
 0x820   :  { %2166 = vmatprep.mubr.msk.f32.mxu0 %vm3063_vm1, %v3061_v0  ;;  %2672 = vmatpush3.bf16.msra.mxu0 %v2671_v3  ;;  %v1390_v3 = vmul.f32 %v1389_v2, %v3392_v36 }
 0x821   :  { %2673 = vmatprep.subr.bf16.mxu0 %v3062_v37 }
 0x824   :  { %2675 = vmatpush3.bf16.msra.mxu0 %v2674_v9  ;;  %v1898_v9 = vld [vmem:[%s3535_s15 + $0x1] ss:$0 sm:$0xff] }
 0x825   :  { %2676 = vmatprep.subr.bf16.mxu0 %v3062_v37  ;;  %v1397_v12 = vadd.f32 %v1898_v9, %v1390_v3 }
 0x828   :  { %2678 = vmatpush3.bf16.msra.mxu0 %v2677_v14 }
 0x829   :  { %2679 = vmatprep.subr.bf16.mxu0 %v3062_v37 }
 0x82c   :  { %2681 = vmatpush3.bf16.msra.mxu0 %v2680_v19  ;;  %v1509_v19 = vld [vmem:[#allocation17 + $0x178] sm:$0xff] }
 0x82d   :  { %2682 = vmatprep.subr.bf16.mxu0 %v3062_v37  ;;  %v2716_v20 = vpack.c.bf16 %v1509_v19, %v1508_v18  ;;  %v1665_v18 = vld [vmem:[#allocation16 + $0x170] sm:$0xff]  ;;  %v1666_v19 = vld [vmem:[#allocation16 + $0x178] sm:$0xff] }
 0x830   :  { %2684 = vmatpush3.bf16.msra.mxu0 %v2683_v22  ;;  %v872_v22 = vrot.slane %v3348_v10, %v871_v21 }
 0x831   :  { %2685 = vmatprep.subr.bf16.mxu0 %v3062_v37 }
 0x832   :  { %v1019_v23 = vadd.f32 %v3352_v13, %v872_v22  ;;  %v1740_v22 = vld [vmem:[#allocation17 + $0x180] sm:$0xff] }
 0x834   :  { %2687 = vmatpush3.bf16.msra.mxu0 %v2686_v26 }
 0x835   :  { %2688 = vmatprep.subr.bf16.mxu0 %v3062_v37 }
 0x838   :  { %2690 = vmatpush3.bf16.msra.mxu0 %v2689_v29  ;;  %v1900_v29 = vld [vmem:[%s3533_s13 + $0x2] ss:$0 sm:$0xff] }
 0x839   :  { %2691 = vmatprep.subr.bf16.mxu0 %v3062_v37 }
 0x83c   :  { %2693 = vmatpush3.bf16.msra.mxu0 %v2692_v43  ;;  %v1652_v43 = vld [vmem:[#allocation16 + $0x108] sm:$0xff] }
 0x83d   :  { %2718 = vmatprep.subr.bf16.mxu0 %v3062_v37 }
 0x8f2   :  { %v1247_v46 = vpop.f32.mrb[8].mxu0 }
 0x8f3   :  { %v1251_v47 = vadd.f32 %v1247_v46, %v950_v45  ;;  %v2098_v48 = vpop.f32.mrb[9].mxu0  ;;  %v1495_v45 = vld [vmem:[#allocation17 + $0x108] sm:$0xff]  ;;  %v1496_v46 = vld [vmem:[#allocation17 + $0x110] sm:$0xff] }
 0x8f4   :  { %v1497_v48 = vld [vmem:[#allocation17 + $0x118] sm:$0xff] }
 0x8f5   :  { %v1252_v49 = vmax.f32 %v1251_v47, 0.0  ;;  %v2695_v47 = vpack.c.bf16 %v1495_v45, %v1494_v44  ;;  %v1653_v44 = vld [vmem:[#allocation16 + $0x110] sm:$0xff]  ;;  %v2719_v45 = vpack.c.bf16 %v1652_v43, %v1651_v42 }
 0x8f6   :  { %v1903_v43 = vld [vmem:[%s3534_s14 + $0x8] sm:$0xf] }
 0x8f7   :  { %2132 = vmatmul.mubr.f32.vlgmr.msra.gmra.mrb[6].mxu1 %v1252_v49  ;;  %v2698_v49 = vpack.c.bf16 %v1497_v48, %v1496_v46  ;;  %v1654_v46 = vld [vmem:[#allocation16 + $0x118] sm:$0xff]  ;;  %v1655_v48 = vld [vmem:[#allocation16 + $0x120] sm:$0xff] }
 0x8f8   :  { %2201 = vmatprep.mubr.msk.f32.mxu1 %vm3063_vm1, %v3061_v0  ;;  %2696 = vmatpush3.bf16.msra.mxu1 %v2695_v47  ;;  %v2722_v47 = vpack.c.bf16 %v1654_v46, %v1653_v44  ;;  %v1629_v44 = vrot.slane %v1903_v43, %v3315_v6  ;;  %v1754_v6 = vld [vmem:[#allocation17 + $0x1f0] sm:$0xff] }
 0x8f9   :  { %2697 = vmatprep.subr.bf16.mxu1 %v3062_v37 }
 0x8fa   :  { %v1630_v46 = vmul.f32 %v1629_v44, %v3392_v36 }
 0x8fc   :  { %2699 = vmatpush3.bf16.msra.mxu1 %v2698_v49  ;;  %v1656_v49 = vld [vmem:[#allocation16 + $0x128] sm:$0xff] }
 0x8fd   :  { %2700 = vmatprep.subr.bf16.mxu1 %v3062_v37 }
 0x9ca   :  { %v1344_v51 = vpop.f32.mrb[6].mxu1 }
 0x9cb   :  { %v1345_v53 = vadd.f32 %v1893_v50, %v1344_v51  ;;  %v2133_v54 = vpop.f32.mrb[7].mxu1  ;;  %v1498_v50 = vld [vmem:[#allocation17 + $0x120] sm:$0xff]  ;;  %v1499_v51 = vld [vmem:[#allocation17 + $0x128] sm:$0xff] }
 0x9cc   :  { %v1501_v54 = vld [vmem:[#allocation17 + $0x138] sm:$0xff] }
 0x9cd   :  { %v1350_v15 = vadd.f32 %v1894_v52, %v1345_v53  ;;  %v2701_v52 = vpack.c.bf16 %v1499_v51, %v1498_v50  ;;  %v1500_v53 = vld [vmem:[#allocation17 + $0x130] sm:$0xff]  ;;  %v2725_v50 = vpack.c.bf16 %v1656_v49, %v1655_v48  ;;  %v1647_v49 = vrot.slane %v1903_v43, %v871_v21 }
 0x9ce   :  { %v1657_v51 = vld [vmem:[#allocation16 + $0x130] sm:$0xff] }
 0x9cf   :  { %1351 = vmax.xlane.f32.xlu0 %v1350_v15  ;;  %2702 = vmatpush3.bf16.msra.mxu1 %v2701_v52  ;;  %v1658_v52 = vld [vmem:[#allocation16 + $0x138] sm:$0xff] }
 0x9d0   :  { %2703 = vmatprep.subr.bf16.mxu1 %v3062_v37 }
 0xa5c   :  { %v1352_v55 = vpop.xlane.xlu0 %1351 }
 0xa5d   :  { %vm1353_vm4 = vcmp.ge.f32.partialorder %v1350_v15, %v1352_v55  ;;  %v2704_v15 = vpack.c.bf16 %v1501_v54, %v1500_v53  ;;  %v1502_v55 = vld [vmem:[#allocation17 + $0x140] sm:$0xff]  ;;  %v2728_v53 = vpack.c.bf16 %v1658_v52, %v1657_v51 }
 0xa5e   :  { %v1354_v56 = vsel %vm1353_vm4, %v3367_v24, 128  ;;  %v1659_v54 = vld [vmem:[#allocation16 + $0x140] sm:$0xff] }
 0xa5f   :  { %v1356_v57 = vshra.s32 %v1354_v56, 16  ;;  %v1355_v59 = vand.u32 65535, %v1354_v56  ;;  %v1503_v56 = vld [vmem:[#allocation17 + $0x148] sm:$0xff]  ;;  %2705 = vmatpush3.bf16.msra.mxu1 %v2704_v15 }
 0xa60   :  { %2706 = vmatprep.subr.bf16.mxu1 %v3062_v37  ;;  %v1660_v15 = vld [vmem:[#allocation16 + $0x148] sm:$0xff] }
 0xa61   :  { %v1358_v58 = vcvt.s32.f32 %v1356_v57  ;;  %v1357_v61 = vcvt.s32.f32 %v1355_v59  ;;  %v2707_v57 = vpack.c.bf16 %v1503_v56, %v1502_v55  ;;  %v1505_v59 = vld [vmem:[#allocation17 + $0x158] sm:$0xff]  ;;  %v2731_v55 = vpack.c.bf16 %v1660_v15, %v1659_v54  ;;  %v1661_v56 = vld [vmem:[#allocation16 + $0x150] sm:$0xff] }
 0xa62   :  { %v1755_v54 = vld [vmem:[#allocation17 + $0x1f8] sm:$0xff]  ;;  %v875_v15 = vsub.s32 3, %v3312_v5 }
 0xa63   :  { %1359 = vmin.xlane.f32.xlu0 %v1358_v58  ;;  %2708 = vmatpush3.bf16.msra.mxu1 %v2707_v57  ;;  %v1662_v57 = vld [vmem:[#allocation16 + $0x158] sm:$0xff] }
 0xa64   :  { %2709 = vmatprep.subr.bf16.mxu1 %v3062_v37 }
 0xaf0   :  { %v1360_v60 = vpop.xlane.xlu0 %1359 }
 0xaf1   :  { %vm1361_vm5 = vcmp.eq.f32.partialorder %v1358_v58, %v1360_v60  ;;  %v1366_v30 = vcvt.f32.s32 %v1360_v60  ;;  %v1504_v58 = vld [vmem:[#allocation17 + $0x150] sm:$0xff] }
 0xaf2   :  { %v1362_v62 = vsel %vm1361_vm5, %v1357_v61, inf  ;;  %v2710_v60 = vpack.c.bf16 %v1505_v59, %v1504_v58  ;;  %v1506_v61 = vld [vmem:[#allocation17 + $0x160] sm:$0xff]  ;;  %v2734_v58 = vpack.c.bf16 %v1662_v57, %v1661_v56 }
 0xaf3   :  { %1363 = vmin.xlane.f32.xlu0 %v1362_v62  ;;  %v1367_v32 = vshll.u32 %v1366_v30, 16  ;;  %v1507_v62 = vld [vmem:[#allocation17 + $0x168] sm:$0xff]  ;;  %v1663_v59 = vld [vmem:[#allocation16 + $0x160] sm:$0xff] }
 0xaf4   :  { %2711 = vmatpush3.bf16.msra.mxu1 %v2710_v60  ;;  %v2713_v63 = vpack.c.bf16 %v1507_v62, %v1506_v61  ;;  %v1664_v60 = vld [vmem:[#allocation16 + $0x168] sm:$0xff] }
 0xaf5   :  { %2712 = vmatprep.subr.bf16.mxu1 %v3062_v37  ;;  %v2737_v61 = vpack.c.bf16 %v1664_v60, %v1663_v59  ;;  %v1907_v60 = vld [vmem:[%s3533_s13 + $0x3] ss:$0 sm:$0xff] }
 0xaf8   :  { %2714 = vmatpush3.bf16.msra.mxu1 %v2713_v63 }
 0xaf9   :  { %2715 = vmatprep.subr.bf16.mxu1 %v3062_v37 }
 0xafc   :  { %2717 = vmatpush3.bf16.msra.mxu1 %v2716_v20  ;;  %v2740_v20 = vpack.c.bf16 %v1666_v19, %v1665_v18 }
 0xafd   :  { %2742 = vmatprep.subr.bf16.mxu1 %v3062_v37 }
 0xb80   :  { %v1364_v31 = vpop.xlane.xlu0 %1363 }
 0xb81   :  { %v1365_v33 = vcvt.f32.s32 %v1364_v31  ;;  %v1901_v31 = vld [vmem:[%s3536_s16 + $0x10] sm:$0xff] }
 0xb83   :  { %v1368_v34 = vadd.s32 %v1367_v32, %v1365_v33 }
 0xb85   :  { %v1369_v4 = vcvt.s32.f32 %v1368_v34 }
 0xb87   :  { %v1372_v38 = vadd.f32 %v1895_v35, %v1369_v4 }
 0xb89   :  { %v1373_v39 = vmul.f32 0.025, %v1372_v38 }
 0xb8b   :  { %v1374_v40 = vadd.f32 -1.0, %v1373_v39 }
 0xb8d   :  { %1378 = vperm.xlu0 %2788, %v1374_v40  }
 0xc0c   :  { %v3440_v11 = vpop.permute.xlu0 %1378 }
 0xc0d   :  { %v1402_v14 = vmul.f32 %v1401_v7, %v3440_v11  ;;  %v1902_v7 = vld [vmem:[%s3537_s17 + $0x10] sm:$0xff] }
 0xc0f   :  { %v1403_v17 = vadd.f32 %v1402_v14, %v1397_v12 }
 0xc11   :  { %2167 = vmatmul.mubr.f32.vlgmr.msra.gmra.mrb[10].mxu0 %v1403_v17 }
 0xc12   :  { %2236 = vmatprep.mubr.msk.f32.mxu0 %vm3063_vm1, %v3061_v0  ;;  %2720 = vmatpush3.bf16.msra.mxu0 %v2719_v45  ;;  %v1641_v45 = vrot.slane %v1903_v43, %v3321_v8  ;;  %v2764_v8 = vpack.c.bf16 %v1755_v54, %v1754_v6 }
 0xc13   :  { %2721 = vmatprep.subr.bf16.mxu0 %v3062_v37 }
 0xc14   :  { %v1642_v48 = vmul.f32 %v1641_v45, %v3440_v11 }
 0xc16   :  { %2723 = vmatpush3.bf16.msra.mxu0 %v2722_v47  ;;  %v1905_v47 = vld [vmem:[%s3535_s15 + $0x2] ss:$0 sm:$0xff] }
 0xc17   :  { %2724 = vmatprep.subr.bf16.mxu0 %v3062_v37 }
 0xc1a   :  { %2726 = vmatpush3.bf16.msra.mxu0 %v2725_v50 }
 0xc1b   :  { %2727 = vmatprep.subr.bf16.mxu0 %v3062_v37 }
 0xc1e   :  { %2729 = vmatpush3.bf16.msra.mxu0 %v2728_v53 }
 0xc1f   :  { %2730 = vmatprep.subr.bf16.mxu0 %v3062_v37 }
 0xc22   :  { %2732 = vmatpush3.bf16.msra.mxu0 %v2731_v55  ;;  %v876_v55 = vrot.slane %v3348_v10, %v875_v15 }
 0xc23   :  { %2733 = vmatprep.subr.bf16.mxu0 %v3062_v37 }
 0xc24   :  { %v1021_v56 = vadd.f32 %v3356_v16, %v876_v55 }
 0xc26   :  { %2735 = vmatpush3.bf16.msra.mxu0 %v2734_v58 }
 0xc27   :  { %2736 = vmatprep.subr.bf16.mxu0 %v3062_v37 }
 0xc2a   :  { %2738 = vmatpush3.bf16.msra.mxu0 %v2737_v61 }
 0xc2b   :  { %2739 = vmatprep.subr.bf16.mxu0 %v3062_v37 }
 0xc2e   :  { %2741 = vmatpush3.bf16.msra.mxu0 %v2740_v20 }
 0xce4   :  { %v1487_v25 = vpop.f32.mrb[10].mxu0 }
 0xce5   :  { %v1491_v26 = vadd.f32 %v1487_v25, %v1019_v23  ;;  %v2168_v27 = vpop.f32.mrb[11].mxu0  ;;  %v1741_v23 = vld [vmem:[#allocation17 + $0x188] sm:$0xff]  ;;  %v1742_v25 = vld [vmem:[#allocation17 + $0x190] sm:$0xff] }
 0xce6   :  { %v1743_v27 = vld [vmem:[#allocation17 + $0x198] sm:$0xff] }
 0xce7   :  { %v1492_v28 = vmax.f32 %v1491_v26, 0.0  ;;  %v2743_v26 = vpack.c.bf16 %v1741_v23, %v1740_v22  ;;  %v1909_v23 = vld [vmem:[%s3537_s17 + $0x18] sm:$0xff]  ;;  %s3009_s17 = scalar_lea.vmem %s1876_s30, 128 }
 0xce8   :  { %p3010_p10 = scmp.ne.s32.totalorder %s1876_s30, %s3009_s17  ;;  %p3015_p12 = scmp.lt.s32.totalorder %s3009_s17, %s3009_s17 }
 0xce9   :  { %2202 = vmatmul.mubr.f32.vlgmr.msra.gmra.mrb[8].mxu1 %v1492_v28  ;;  %v2746_v28 = vpack.c.bf16 %v1743_v27, %v1742_v25 }
 0xcea   :  { %2271 = vmatprep.mubr.msk.f32.mxu1 %vm3063_vm1, %v3061_v0  ;;  %2744 = vmatpush3.bf16.msra.mxu1 %v2743_v26  ;;  %p3016_p13 = por %p3015_p12, %p3014_p11 }
 0xceb   :  { %2745 = vmatprep.subr.bf16.mxu1 %v3062_v37 }
 0xcec   :  { %p3017_p0 = pnand %p3016_p13, %p3010_p10 }
 0xcee   :  { %2747 = vmatpush3.bf16.msra.mxu1 %v2746_v28 }
 0xcef   :  { %2748 = vmatprep.subr.bf16.mxu1 %v3062_v37 }
 0xdbc   :  { %v1584_v30 = vpop.f32.mrb[8].mxu1 }
 0xdbd   :  { %v1585_v32 = vadd.f32 %v1900_v29, %v1584_v30  ;;  %v2203_v33 = vpop.f32.mrb[9].mxu1  ;;  %v1744_v29 = vld [vmem:[#allocation17 + $0x1a0] sm:$0xff]  ;;  %v1745_v30 = vld [vmem:[#allocation17 + $0x1a8] sm:$0xff] }
 0xdbe   :  { %v1747_v33 = vld [vmem:[#allocation17 + $0x1b8] sm:$0xff] }
 0xdbf   :  { %v1590_v13 = vadd.f32 %v1901_v31, %v1585_v32  ;;  %v2749_v31 = vpack.c.bf16 %v1745_v30, %v1744_v29  ;;  %v1746_v32 = vld [vmem:[#allocation17 + $0x1b0] sm:$0xff]  ;;  %v1150_v29 = vsel %vm1144_vm10, %v3392_v36, 0.0 }
 0xdc0   :  { %v1381_v30 = vsel %vm1375_vm11, %v3440_v11, %v1150_v29 }
 0xdc1   :  { %1591 = vmax.xlane.f32.xlu1 %v1590_v13  ;;  %2750 = vmatpush3.bf16.msra.mxu1 %v2749_v31 }
 0xdc2   :  { %2751 = vmatprep.subr.bf16.mxu1 %v3062_v37 }
 0xe4e   :  { %v1592_v34 = vpop.xlane.xlu1 %1591 }
 0xe4f   :  { %vm1593_vm6 = vcmp.ge.f32.partialorder %v1590_v13, %v1592_v34  ;;  %v2752_v13 = vpack.c.bf16 %v1747_v33, %v1746_v32  ;;  %v1748_v34 = vld [vmem:[#allocation17 + $0x1c0] sm:$0xff] }
 0xe50   :  { %v1594_v35 = vsel %vm1593_vm6, %v3367_v24, 128 }
 0xe51   :  { %v1596_v4 = vshra.s32 %v1594_v35, 16  ;;  %v1595_v0 = vand.u32 65535, %v1594_v35  ;;  %v1749_v35 = vld [vmem:[#allocation17 + $0x1c8] sm:$0xff]  ;;  %2753 = vmatpush3.bf16.msra.mxu1 %v2752_v13 }
 0xe52   :  { %2754 = vmatprep.subr.bf16.mxu1 %v3062_v37 }
 0xe53   :  { %v1598_v38 = vcvt.s32.f32 %v1596_v4  ;;  %v1597_v40 = vcvt.s32.f32 %v1595_v0  ;;  %v2755_v4 = vpack.c.bf16 %v1749_v35, %v1748_v34  ;;  %v1751_v0 = vld [vmem:[#allocation17 + $0x1d8] sm:$0xff] }
 0xe55   :  { %1599 = vmin.xlane.f32.xlu1 %v1598_v38  ;;  %2756 = vmatpush3.bf16.msra.mxu1 %v2755_v4 }
 0xe56   :  { %2757 = vmatprep.subr.bf16.mxu1 %v3062_v37 }
 0xee2   :  { %v1600_v39 = vpop.xlane.xlu1 %1599 }
 0xee3   :  { %vm1601_vm7 = vcmp.eq.f32.partialorder %v1598_v38, %v1600_v39  ;;  %v1606_v62 = vcvt.f32.s32 %v1600_v39  ;;  %v1750_v38 = vld [vmem:[#allocation17 + $0x1d0] sm:$0xff] }
 0xee4   :  { %v1602_v41 = vsel %vm1601_vm7, %v1597_v40, inf  ;;  %v2758_v39 = vpack.c.bf16 %v1751_v0, %v1750_v38  ;;  %v1752_v40 = vld [vmem:[#allocation17 + $0x1e0] sm:$0xff] }
 0xee5   :  { %1603 = vmin.xlane.f32.xlu1 %v1602_v41  ;;  %v1607_v1 = vshll.u32 %v1606_v62, 16  ;;  %v1753_v41 = vld [vmem:[#allocation17 + $0x1e8] sm:$0xff] }
 0xee6   :  { %2759 = vmatpush3.bf16.msra.mxu1 %v2758_v39  ;;  %v2761_v42 = vpack.c.bf16 %v1753_v41, %v1752_v40  ;;  %v1908_v62 = vld [vmem:[%s3536_s16 + $0x18] sm:$0xff] }
 0xee7   :  { %2760 = vmatprep.subr.bf16.mxu1 %v3062_v37 }
 0xeea   :  { %2762 = vmatpush3.bf16.msra.mxu1 %v2761_v42 }
 0xeeb   :  { %2763 = vmatprep.subr.bf16.mxu1 %v3062_v37  ;;  %v1637_v37 = vadd.f32 %v1905_v47, %v1630_v46 }
 0xeed   :  { %v1643_v51 = vadd.f32 %v1642_v48, %v1637_v37 }
 0xeee   :  { %2765 = vmatpush3.bf16.msra.mxu1 %v2764_v8 }
 0xf72   :  { %v1604_v63 = vpop.xlane.xlu1 %1603 }
 0xf73   :  { %v1605_v2 = vcvt.f32.s32 %v1604_v63 }
 0xf75   :  { %v1608_v3 = vadd.s32 %v1607_v1, %v1605_v2 }
 0xf77   :  { %v1609_v9 = vcvt.s32.f32 %v1608_v3 }
 0xf79   :  { %v1612_v12 = vadd.f32 %v1902_v7, %v1609_v9 }
 0xf7b   :  { %v1613_v14 = vmul.f32 0.025, %v1612_v12 }
 0xf7d   :  { %v1614_v17 = vadd.f32 -1.0, %v1613_v14 }
 0xf7f   :  { %1618 = vperm.xlu0 %2788, %v1614_v17  }
 0xffe   :  { %v1619_v50 = vpop.permute.xlu0 %1618 }
 0xfff   :  { %v1648_v52 = vmul.f32 %v1647_v49, %v1619_v50  ;;  %v1621_v31 = vsel %vm1615_vm12, %v1619_v50, %v1381_v30 }
0x1001   :  { %v1649_v53 = vadd.f32 %v1648_v52, %v1643_v51 }
0x1003   :  { %2237 = vmatmul.mubr.f32.vlgmr.msra.gmra.mrb[12].mxu0 %v1649_v53 }
0x10d6   :  { %v1733_v57 = vpop.f32.mrb[12].mxu0 }
0x10d7   :  { %v1737_v58 = vadd.f32 %v1733_v57, %v1021_v56  ;;  %v2238_v59 = vpop.f32.mrb[13].mxu0 }
0x10d9   :  { %v1738_v21 = vmax.f32 %v1737_v58, 0.0 }
0x10db   :  { %2272 = vmatmul.mubr.f32.vlgmr.msra.gmra.mrb[10].mxu1 %v1738_v21 }
0x11ae   :  { %v1830_v61 = vpop.f32.mrb[10].mxu1 }
0x11af   :  { %v1831_v63 = vadd.f32 %v1907_v60, %v1830_v61  ;;  %v2273_v5 = vpop.f32.mrb[11].mxu1 }
0x11b1   :  { %v1836_v1 = vadd.f32 %v1908_v62, %v1831_v63 }
0x11b3   :  { %1837 = vmax.xlane.f32.xlu1 %v1836_v1 }
0x1240   :  { %v1838_v10 = vpop.xlane.xlu1 %1837 }
0x1241   :  { %vm1839_vm8 = vcmp.ge.f32.partialorder %v1836_v1, %v1838_v10 }
0x1242   :  { %v1840_v16 = vsel %vm1839_vm8, %v3367_v24, 128 }
0x1243   :  { %v1842_v2 = vshra.s32 %v1840_v16, 16  ;;  %v1841_v7 = vand.u32 65535, %v1840_v16 }
0x1245   :  { %v1844_v3 = vcvt.s32.f32 %v1842_v2  ;;  %v1843_v12 = vcvt.s32.f32 %v1841_v7 }
0x1247   :  { %1845 = vmin.xlane.f32.xlu0 %v1844_v3 }
0x12d4   :  { %v1846_v9 = vpop.xlane.xlu0 %1845 }
0x12d5   :  { %vm1847_vm9 = vcmp.eq.f32.partialorder %v1844_v3, %v1846_v9  ;;  %v1852_v17 = vcvt.f32.s32 %v1846_v9 }
0x12d6   :  { %v1848_v14 = vsel %vm1847_vm9, %v1843_v12, inf }
0x12d7   :  { %1849 = vmin.xlane.f32.xlu1 %v1848_v14  ;;  %v1853_v19 = vshll.u32 %v1852_v17, 16 }
0x1364   :  { %v1850_v18 = vpop.xlane.xlu1 %1849 }
0x1365   :  { %v1851_v20 = vcvt.f32.s32 %v1850_v18 }
0x1367   :  { %v1854_v22 = vadd.s32 %v1853_v19, %v1851_v20 }
0x1369   :  { %v1855_v25 = vcvt.s32.f32 %v1854_v22 }
0x136b   :  { %v1858_v26 = vadd.f32 %v1909_v23, %v1855_v25 }
0x136d   :  { %v1859_v27 = vmul.f32 0.025, %v1858_v26 }
0x136f   :  { %v1860_v28 = vadd.f32 -1.0, %v1859_v27 }
0x1371   :  { %1864 = vperm.xlu1 %2787, %v1860_v28  }
0x13f0   :  { %v1865_v32 = vpop.permute.xlu1 %1864 }
0x13f1   :  { %v1867_v33 = vsel %vm1861_vm13, %v1865_v32, %v1621_v31 }
0x13f2   :  { %1868 = vst [vmem:[#allocation19] sm:$0xff] %v1867_v33 }
0x13f3   :  { %3020 = shalt.err (!%p3017_p0)
}
0x13f4   :  { %s3021_s6 = scalar_lea.hbm %s3538_s18, 128 }
0x13f5   :  { %p3022_p1 = scmp.ne.s32.totalorder %s3538_s18, %s3021_s6  ;;  %p3025_p2 = scmp.lt.u32.totalorder %s3021_s6, %s3538_s18 }
0x13f7   :  { %p3027_p3 = pnand %p3025_p2, %p3022_p1 }
0x13f9   :  { %3030 = shalt.err (!%p3027_p3)
}
0x13fa   :  { %1878 = dma.vmem_to_hbm [thread:$0]  %s1876_s30, 128, %s3538_s18, [#allocation4]  }
0x13fb   :  { %3043 = dma.done.wait [#allocation4], 128  }
0x13fc   :  { %3044 = vsyncadd [#allocation4], 4294967168 }
0x13fd   :  { %1882 = vsyncpa [#allocation3], 1 }
0x13fe   :  { %1883 = vsyncpa [#allocation6], 1 }
0x13ff   :  { %1884 = vsyncpa [#allocation9], 1 }
0x1400   :  { %1885 = vsyncpa [#allocation12], 1 }
0x1401   :  { %1886 = vsyncpa [#allocation15], 1 }
0x1402   :  { %1887 = vsyncpa [#allocation18], 1 }
0x1403   :  { %1888 = vsyncpa [#allocation4], 1 }

</bundles_post_ra>
